<compile_context>
chip_gen: v7x
topology: tpu7x:2x2x1
jax: 0.10.0
libtpu: 0.0.40
codegen_flags: <defaults>
</compile_context>

<pallas_src>
import jax
import jax.numpy as jnp
from jax.experimental import pallas as pl
from jax.experimental.pallas import tpu as pltpu


def _round_up(x, m):
    return ((x + m - 1) // m) * m


def _vmem_capacity_bytes():
    """Physical per-core VMEM, queried from the runtime with a safe fallback."""
    try:
        return int(pltpu.get_tpu_info().vmem_capacity_bytes)
    except Exception:
        try:
            kind = jax.devices()[0].device_kind.lower()
        except Exception:
            kind = ""
        if "v7" in kind:
            return 64 * 1024 * 1024
        return 128 * 1024 * 1024


def _has_bf16_vpu():
    """v6e/v7x have bf16 VALUs; v5e and older do not (keep f32 math there)."""
    try:
        kind = jax.devices()[0].device_kind.lower()
    except Exception:
        return False
    return not any(t in kind for t in ("v2", "v3", "v4", "v5"))


def _choose_tiles(n_rows, seq_len, hidden, itemsize, budget):
    """Pick (TN, TS) so the [TN, TS, H] emb block fits `budget` bytes.

    TS only needs to be a multiple of 8 (the mask travels as [N, S, 1]), so for
    BERT-sized hidden dims we shrink TS before TN: the block never silently
    overshoots the budget and the finalize matmul keeps a healthy row count.
    """
    elem = hidden * itemsize                      # bytes per (row, seq position)

    # Seq tile: whole sequence (rounded down to 8) capped at 512; any ragged
    # tail is masked in-kernel.
    if seq_len < 8:
        ts = seq_len
    else:
        ts = min((seq_len // 8) * 8, 512)

    tn = (budget // max(1, ts * elem)) // 8 * 8
    if tn < 8:
        # Even an 8-row slab of this TS overshoots the budget (large hidden):
        # shrink the seq tile instead, aiming for ~32 rows per block.
        if seq_len >= 8:
            ts_fit = (budget // max(1, 32 * elem)) // 8 * 8
            ts = min(ts, ts_fit) if ts_fit >= 8 else 8
        tn = max(8, (budget // max(1, ts * elem)) // 8 * 8)

    # Row caps.
    if n_rows < 8:
        tn = n_rows                               # block == full dim (legal)
    else:
        tn = min(tn, max(8, (n_rows // 8) * 8))   # never exceed the array
        if n_rows >= 16:
            # keep >= 2 row tiles so both v7x TensorCores get work
            tn = min(tn, _round_up(-(-n_rows // 2), 8))
        tn = max(tn, 8)
    return tn, ts


# ----------------------------------------------------------------------------
# Pallas kernel: mean_pooling (exactly the PyTorch helper) + linear head,
# tiled over rows (parallel) and sequence (reduction, arbitrary).
# ----------------------------------------------------------------------------
def _make_pool_project_kernel(ts, seq_len, ragged_seq, compute_dtype):
    def kernel(emb_ref, mask_ref, w_ref, b_ref, out_ref, acc_ref, msum_ref):
        s = pl.program_id(1)

        @pl.when(s == 0)
        def _init():
            acc_ref[...] = jnp.zeros_like(acc_ref)
            msum_ref[...] = jnp.zeros_like(msum_ref)

        # Attention mask tile [TN, TS, 1]: cast from its original integer dtype
        # in-kernel (no f32 copy in HBM).  Mask math stays f32 (exact counts).
        mask = mask_ref[...].astype(jnp.float32)
        if ragged_seq:
            pos = s * ts + jax.lax.broadcasted_iota(jnp.int32, mask.shape, 1)
            valid = pos < seq_len
            mask = jnp.where(valid, mask, 0.0)

        msum_ref[...] += jnp.sum(mask, axis=1)                      # [TN, 1]

        # token_embeddings * input_mask_expanded, summed over seq, accumulated
        # into f32 scratch.  On v6e/v7x with bf16 inputs the multiply stays in
        # bf16 (mask is 0/1 so the product is exact); accumulation is f32.
        emb = emb_ref[...]                                          # [TN, TS, H]
        if emb.dtype != compute_dtype:
            emb = emb.astype(compute_dtype)
        prod = emb * mask.astype(compute_dtype)
        if ragged_seq:
            # OOB tail of a boundary seq block may hold garbage (NaN): zero it.
            prod = jnp.where(valid, prod, jnp.zeros_like(prod))
        acc_ref[...] += jnp.sum(prod, axis=1, dtype=jnp.float32)    # [TN, H]

        @pl.when(s == pl.num_programs(1) - 1)
        def _finalize():
            # torch.clamp(input_mask_expanded.sum(1), min=1e-9)
            pooled = acc_ref[...] / jnp.maximum(msum_ref[...], 1e-9)
            out = jnp.dot(pooled, w_ref[...].astype(jnp.float32),
                          preferred_element_type=jnp.float32) + b_ref[...]
            out_ref[...] = out.astype(out_ref.dtype)

    return kernel


def pool_project(emb, mask, w, b):
    """mean_pooling + linear projection as one tiled, pipelined Pallas kernel.

    emb: [N, S, H] (f32 or bf16), mask: [N, S] (any int/float dtype),
    w: [H, O], b: [1, O]  ->  [N, O] f32.
    """
    N, S, H = emb.shape
    Hw, O = w.shape
    assert Hw == H
    if b.ndim == 1:
        b = b.reshape(1, -1)

    itemsize = jnp.dtype(emb.dtype).itemsize
    vmem_cap = _vmem_capacity_bytes()
    # Per-input-buffer budget: ~4 MiB on v7x (64 MiB VMEM), ~8 MiB on v5e/v6e.
    budget = max(2 * 1024 * 1024, vmem_cap // 16)
    TN, TS = _choose_tiles(N, S, H, itemsize, budget)

    O_pad = _round_up(O, 128)              # lane-dense output stores
    if O_pad != O:
        w = jnp.pad(w, ((0, 0), (0, O_pad - O)))
        b = jnp.pad(b, ((0, 0), (0, O_pad - O)))

    # [N, S] -> [N, S, 1]: mask sits on sublanes, broadcast along H is a lane
    # splat, and TS only has to be a multiple of 8.
    mask3 = mask.reshape(N, S, 1)
    mask_itemsize = jnp.dtype(mask3.dtype).itemsize

    compute_dtype = (jnp.bfloat16
                     if (emb.dtype == jnp.bfloat16 and _has_bf16_vpu())
                     else jnp.float32)

    ragged_seq = (S % TS) != 0
    grid = (pl.cdiv(N, TN), pl.cdiv(S, TS))
    # TODO(synk): for tiny batches (e.g. B=2) grid[0]==1 and v7x's second
    # TensorCore idles; a two-stage seq reduction would expose a parallel axis.

    # Scoped-VMEM request: double-buffered emb/mask/out blocks, weights, bias,
    # f32 scratch (+ lane padding of trailing size-1 dims), with ~25% slack.
    TN8 = _round_up(TN, 8)
    emb_block = TN * TS * H * itemsize
    mask_block = TN * TS * 128 * mask_itemsize     # trailing dim 1 lane-padded
    wb_bytes = (_round_up(H, 8) * O_pad + 8 * O_pad) * 4
    out_block = TN8 * O_pad * 4
    scratch = TN8 * (H + 128) * 4
    est = 2 * (emb_block + mask_block) + 2 * wb_bytes + 2 * out_block + scratch
    vmem_limit = int(min(3 * vmem_cap // 4,
                         max(est + est // 4 + (2 << 20), 16 << 20)))

    # NOTE: w/b (constant index_map) could be single-buffered via
    # pipeline_mode=pl.Buffered(1); left at the default for version robustness.
    kernel = _make_pool_project_kernel(TS, S, ragged_seq, compute_dtype)
    out = pl.pallas_call(
        kernel,
        out_shape=jax.ShapeDtypeStruct((N, O_pad), jnp.float32),
        grid=grid,
        in_specs=[
            pl.BlockSpec((TN, TS, H), lambda n, s: (n, s, 0)),
            pl.BlockSpec((TN, TS, 1), lambda n, s: (n, s, 0)),
            pl.BlockSpec((H, O_pad), lambda n, s: (0, 0)),
            pl.BlockSpec((1, O_pad), lambda n, s: (0, 0)),
        ],
        out_specs=pl.BlockSpec((TN, O_pad), lambda n, s: (n, 0)),
        scratch_shapes=[
            pltpu.VMEM((TN, H), jnp.float32),   # sum_embeddings accumulator
            pltpu.VMEM((TN, 1), jnp.float32),   # sum_mask accumulator
        ],
        compiler_params=pltpu.CompilerParams(
            dimension_semantics=("parallel", "arbitrary"),
            vmem_limit_bytes=vmem_limit,
        ),
    )(emb, mask3, w, b)

    return out[:, :O] if O_pad != O else out


# ----------------------------------------------------------------------------
# Pure-JAX reference of the same math (for correctness checks)
# ----------------------------------------------------------------------------
def _ref_pool_project(emb, mask, w, b):
    m = mask.astype(jnp.float32)
    e = emb.astype(jnp.float32)
    sum_emb = jnp.sum(e * m[:, :, None], axis=1)
    sum_mask = jnp.maximum(jnp.sum(m, axis=1, keepdims=True), 1e-9)
    return jnp.dot(sum_emb / sum_mask, w, precision=jax.lax.Precision.HIGHEST) + b


# ----------------------------------------------------------------------------
# CoupledBert: prepare_description_tokens + predict/forward path
# ----------------------------------------------------------------------------
def prepare_description_tokens(desc_emb, desc_mask, w_contrastive, b_contrastive):
    """contrastive_head(mean_pooling(bert(desc), mask)) for every class
    description.  Descriptions and the contrastive head are static across
    queries, so this runs once and the result is reused by every forward."""
    return pool_project(desc_emb, desc_mask, w_contrastive, b_contrastive)   # [C, D]


def coupled_bert_forward(query_emb, query_mask, desc_tokens,
                         w_contrastive, b_contrastive, w_classifier, b_classifier,
                         k, labels=None):
    # TODO(synk): the real module runs external HuggingFace BERT encoders
    # (self.nli.bert / self.classifier) and tokenizers; their token embeddings
    # are the kernel inputs here.
    D = w_contrastive.shape[1]
    C = w_classifier.shape[1]

    # Fused query-side heads: pool the query once and project against the
    # concatenated [H, D+C] weight (contrastive ++ classifier) so query_emb is
    # read from HBM and pooled exactly once.
    w_query = jnp.concatenate([w_contrastive, w_classifier], axis=1)     # [H, D+C]
    b_query = jnp.concatenate([b_contrastive, b_classifier], axis=1)     # [1, D+C]
    query_out = pool_project(query_emb, query_mask, w_query, b_query)    # [B, D+C]
    cls_embeddings = query_out[:, :D]                                    # [B, D]
    preds = query_out[:, D:D + C]                                        # [B, C]

    # Top-k selection (plain-JAX glue). lax.top_k (descending) reversed to
    # ascending matches argsort(axis=1)[:, -k:] from the PyTorch code.
    # TODO(synk): tie-breaking on exactly tied logits may differ from torch.argsort.
    _, top_idx = jax.lax.top_k(preds, k)
    top_k_idx = top_idx[:, ::-1].reshape(-1)          # ravel, like the torch code
    desc_embeddings = desc_tokens[top_k_idx]          # gather desc_tokens[j]
    out_classes = top_k_idx.astype(jnp.int32)

    if labels is not None:
        return ((cls_embeddings, desc_embeddings, out_classes, preds,
                 labels.astype(jnp.int32)), labels)
    return ((cls_embeddings, desc_embeddings, out_classes, preds), labels)


if __name__ == "__main__":
    key = jax.random.PRNGKey(0)
    B, S, H = 2, 8, 32      # batch, query seq len, hidden size
    D = 16                  # contrastive head output dim
    C = 50                  # num_classes (module default)
    K = 10                  # k           (module default)
    Sd = 8                  # description seq len

    ks = jax.random.split(key, 7)

    # query-side "BERT output" token embeddings + attention mask
    query_emb = jax.random.normal(ks[0], (B, S, H), jnp.float32)
    query_lens = jnp.array([S, S - 3])
    query_mask = (jnp.arange(S)[None, :] < query_lens[:, None]).astype(jnp.int32)   # [B, S]

    # description-side token embeddings + masks (one row per class description)
    desc_emb = jax.random.normal(ks[1], (C, Sd, H), jnp.float32)
    desc_lens = (jnp.arange(C) % Sd) + 1
    desc_mask = (jnp.arange(Sd)[None, :] < desc_lens[:, None]).astype(jnp.int32)    # [C, Sd]

    # deterministic parameters (contrastive head H->D, classifier head H->C)
    w_contrastive = 0.05 * jax.random.normal(ks[2], (H, D), jnp.float32)
    b_contrastive = 0.01 * jax.random.normal(ks[3], (1, D), jnp.float32)
    w_classifier = 0.05 * jax.random.normal(ks[4], (H, C), jnp.float32)
    b_classifier = 0.01 * jax.random.normal(ks[5], (1, C), jnp.float32)

    # -------------------- f32 path (matches the PyTorch module) --------------
    desc_tokens = prepare_description_tokens(desc_emb, desc_mask,
                                             w_contrastive, b_contrastive)  # hoisted
    out = coupled_bert_forward(query_emb, query_mask, desc_tokens,
                               w_contrastive, b_contrastive,
                               w_classifier, b_classifier, K)
    jax.block_until_ready(out)

    (cls_embeddings, desc_embeddings, out_classes, preds), labels = out
    assert cls_embeddings.shape == (B, D)
    assert desc_embeddings.shape == (B * K, D)
    assert out_classes.shape == (B * K,)
    assert preds.shape == (B, C)

    # correctness check against a pure-JAX reference of the same math
    ref_cls = _ref_pool_project(query_emb, query_mask, w_contrastive, b_contrastive)
    ref_preds = _ref_pool_project(query_emb, query_mask, w_classifier, b_classifier)
    ref_desc_tokens = _ref_pool_project(desc_emb, desc_mask, w_contrastive, b_contrastive)
    _, ref_top_idx = jax.lax.top_k(ref_preds, K)
    ref_topk = ref_top_idx[:, ::-1].reshape(-1)

    assert jnp.allclose(cls_embeddings, ref_cls, atol=1e-3, rtol=1e-3)
    assert jnp.allclose(preds, ref_preds, atol=1e-3, rtol=1e-3)
    assert jnp.allclose(desc_tokens, ref_desc_tokens, atol=1e-3, rtol=1e-3)
    assert jnp.allclose(desc_embeddings, ref_desc_tokens[out_classes], atol=1e-3, rtol=1e-3)
    assert jnp.array_equal(out_classes, ref_topk.astype(jnp.int32))

    # -------------------- ragged shapes (no wrapper-side padding) ------------
    Nr, Sr = 5, 13
    emb_r = jax.random.normal(ks[6], (Nr, Sr, H), jnp.float32)
    lens_r = jnp.array([13, 1, 7, 13, 4])
    mask_r = (jnp.arange(Sr)[None, :] < lens_r[:, None]).astype(jnp.int32)
    out_r = pool_project(emb_r, mask_r, w_contrastive, b_contrastive)
    jax.block_until_ready(out_r)
    ref_r = _ref_pool_project(emb_r, mask_r, w_contrastive, b_contrastive)
    assert jnp.allclose(out_r, ref_r, atol=1e-3, rtol=1e-3)

    # -------------------- bf16 HBM-input path (memory-bound optimization) ----
    q_bf16 = query_emb.astype(jnp.bfloat16)
    d_bf16 = desc_emb.astype(jnp.bfloat16)
    desc_tokens_bf16 = prepare_description_tokens(d_bf16, desc_mask,
                                                  w_contrastive, b_contrastive)
    out_bf16 = coupled_bert_forward(q_bf16, query_mask, desc_tokens_bf16,
                                    w_contrastive, b_contrastive,
                                    w_classifier, b_classifier, K)
    jax.block_until_ready(out_bf16)
    (cls_bf16, _, _, preds_bf16), _ = out_bf16
    ref_cls_bf16 = _ref_pool_project(q_bf16, query_mask, w_contrastive, b_contrastive)
    ref_preds_bf16 = _ref_pool_project(q_bf16, query_mask, w_classifier, b_classifier)
    assert jnp.allclose(cls_bf16, ref_cls_bf16, atol=1e-3, rtol=1e-3)
    assert jnp.allclose(preds_bf16, ref_preds_bf16, atol=1e-3, rtol=1e-3)

    print("KERNEL_OK")
</pallas_src>

<mosaic_0001>
module attributes {stable_mosaic.version = 11 : i64} {
  func.func @kernel(%arg0: i32, %arg1: i32, %arg2: memref<32x8x32xf32, #tpu.memory_space<vmem>>, %arg3: memref<32x8x1xi32, #tpu.memory_space<vmem>>, %arg4: memref<32x128xf32, #tpu.memory_space<vmem>>, %arg5: memref<1x128xf32, #tpu.memory_space<vmem>>, %arg6: memref<32x128xf32, #tpu.memory_space<vmem>>, %arg7: memref<32x32xf32, #tpu.memory_space<vmem>>, %arg8: memref<32x1xf32, #tpu.memory_space<vmem>>) attributes {dimension_semantics = [#tpu.dimension_semantics<parallel>, #tpu.dimension_semantics<arbitrary>], iteration_bounds = array<i64: 2, 1>, scalar_prefetch = 0 : i64, scratch_operands = 2 : i64, tpu.core_type = #tpu.core_type<tc>, window_params = [{transform_indices = @transform_0, window_bounds = array<i64: 32, 8, 32>}, {transform_indices = @transform_1, window_bounds = array<i64: 32, 8, 1>}, {pipeline_mode = #tpu.pipeline_mode<synchronous>, transform_indices = @transform_2, window_bounds = array<i64: 32, 128>}, {pipeline_mode = #tpu.pipeline_mode<synchronous>, transform_indices = @transform_3, window_bounds = array<i64: 1, 128>}, {transform_indices = @transform_4, window_bounds = array<i64: 32, 128>}]} {
    %c0_i32 = arith.constant 0 : i32
    %0 = arith.cmpi eq, %arg1, %c0_i32 : i32
    %1 = arith.extui %0 : i1 to i32
    %c0_i32_0 = arith.constant 0 : i32
    %2 = arith.cmpi ne, %1, %c0_i32_0 : i32
    scf.if %2 {
      %cst_17 = arith.constant 0.000000e+00 : f32
      %19 = vector.broadcast %cst_17 : f32 to vector<32x32xf32>
      %c0_18 = arith.constant 0 : index
      %c0_19 = arith.constant 0 : index
      %20 = vector.load %arg7[%c0_18, %c0_19] : memref<32x32xf32, #tpu.memory_space<vmem>>, vector<32x32xf32>
      tpu.vector_store %arg7[%c0_18, %c0_19], %19 {strides = array<i32>} : memref<32x32xf32, #tpu.memory_space<vmem>>, vector<32x32xf32>,
      %cst_20 = arith.constant 0.000000e+00 : f32
      %21 = vector.broadcast %cst_20 : f32 to vector<32x1xf32>
      %c0_21 = arith.constant 0 : index
      %c0_22 = arith.constant 0 : index
      %22 = vector.load %arg8[%c0_21, %c0_22] : memref<32x1xf32, #tpu.memory_space<vmem>>, vector<32x1xf32>
      tpu.vector_store %arg8[%c0_21, %c0_22], %21 {strides = array<i32>} : memref<32x1xf32, #tpu.memory_space<vmem>>, vector<32x1xf32>,
    } else {
    }
    %c0 = arith.constant 0 : index
    %c0_1 = arith.constant 0 : index
    %c0_2 = arith.constant 0 : index
    %3 = vector.load %arg3[%c0, %c0_1, %c0_2] : memref<32x8x1xi32, #tpu.memory_space<vmem>>, vector<32x8x1xi32>
    %4 = arith.sitofp %3 : vector<32x8x1xi32> to vector<32x8x1xf32>
    %c0_3 = arith.constant 0 : index
    %c0_4 = arith.constant 0 : index
    %5 = vector.load %arg8[%c0_3, %c0_4] : memref<32x1xf32, #tpu.memory_space<vmem>>, vector<32x1xf32>
    %cst = arith.constant dense<0.000000e+00> : vector<32x1xf32>
    %6 = vector.multi_reduction <add>, %4, %cst [1] : vector<32x8x1xf32> to vector<32x1xf32>
    %7 = arith.addf %5, %6 : vector<32x1xf32>
    %c0_5 = arith.constant 0 : index
    %c0_6 = arith.constant 0 : index
    %8 = vector.load %arg8[%c0_5, %c0_6] : memref<32x1xf32, #tpu.memory_space<vmem>>, vector<32x1xf32>
    tpu.vector_store %arg8[%c0_5, %c0_6], %7 {strides = array<i32>} : memref<32x1xf32, #tpu.memory_space<vmem>>, vector<32x1xf32>,
    %c0_7 = arith.constant 0 : index
    %c0_8 = arith.constant 0 : index
    %c0_9 = arith.constant 0 : index
    %9 = vector.load %arg2[%c0_7, %c0_8, %c0_9] : memref<32x8x32xf32, #tpu.memory_space<vmem>>, vector<32x8x32xf32>
    %10 = vector.broadcast %4 : vector<32x8x1xf32> to vector<32x8x32xf32>
    %11 = arith.mulf %9, %10 : vector<32x8x32xf32>
    %c0_10 = arith.constant 0 : index
    %c0_11 = arith.constant 0 : index
    %12 = vector.load %arg7[%c0_10, %c0_11] : memref<32x32xf32, #tpu.memory_space<vmem>>, vector<32x32xf32>
    %cst_12 = arith.constant dense<0.000000e+00> : vector<32x32xf32>
    %13 = vector.multi_reduction <add>, %11, %cst_12 [1] : vector<32x8x32xf32> to vector<32x32xf32>
    %14 = arith.addf %12, %13 : vector<32x32xf32>
    %c0_13 = arith.constant 0 : index
    %c0_14 = arith.constant 0 : index
    %15 = vector.load %arg7[%c0_13, %c0_14] : memref<32x32xf32, #tpu.memory_space<vmem>>, vector<32x32xf32>
    tpu.vector_store %arg7[%c0_13, %c0_14], %14 {strides = array<i32>} : memref<32x32xf32, #tpu.memory_space<vmem>>, vector<32x32xf32>,
    %c0_i32_15 = arith.constant 0 : i32
    %16 = arith.cmpi eq, %arg1, %c0_i32_15 : i32
    %17 = arith.extui %16 : i1 to i32
    %c0_i32_16 = arith.constant 0 : i32
    %18 = arith.cmpi ne, %17, %c0_i32_16 : i32
    scf.if %18 {
      %c0_17 = arith.constant 0 : index
      %c0_18 = arith.constant 0 : index
      %19 = vector.load %arg7[%c0_17, %c0_18] : memref<32x32xf32, #tpu.memory_space<vmem>>, vector<32x32xf32>
      %c0_19 = arith.constant 0 : index
      %c0_20 = arith.constant 0 : index
      %20 = vector.load %arg8[%c0_19, %c0_20] : memref<32x1xf32, #tpu.memory_space<vmem>>, vector<32x1xf32>
      %cst_21 = arith.constant 9.99999971E-10 : f32
      %21 = vector.broadcast %cst_21 : f32 to vector<32x1xf32>
      %22 = arith.maximumf %20, %21 : vector<32x1xf32>
      %23 = vector.broadcast %22 : vector<32x1xf32> to vector<32x32xf32>
      %24 = arith.divf %19, %23 : vector<32x32xf32>
      %c0_22 = arith.constant 0 : index
      %c0_23 = arith.constant 0 : index
      %25 = vector.load %arg4[%c0_22, %c0_23] : memref<32x128xf32, #tpu.memory_space<vmem>>, vector<32x128xf32>
      %cst_24 = arith.constant dense<0.000000e+00> : vector<32x128xf32>
      %26 = tpu.matmul %24, %25, %cst_24 {dimension_numbers = #tpu.dot_dimension_numbers<[1], [0], [0], [1], [0, 0, 1, 1], [], []>} : vector<32x32xf32>, vector<32x128xf32>, vector<32x128xf32> -> vector<32x128xf32>
      %c0_25 = arith.constant 0 : index
      %c0_26 = arith.constant 0 : index
      %27 = vector.load %arg5[%c0_25, %c0_26] : memref<1x128xf32, #tpu.memory_space<vmem>>, vector<1x128xf32>
      %28 = vector.broadcast %27 : vector<1x128xf32> to vector<32x128xf32>
      %29 = arith.addf %26, %28 : vector<32x128xf32>
      %c0_27 = arith.constant 0 : index
      %c0_28 = arith.constant 0 : index
      %30 = vector.load %arg6[%c0_27, %c0_28] : memref<32x128xf32, #tpu.memory_space<vmem>>, vector<32x128xf32>
      tpu.vector_store %arg6[%c0_27, %c0_28], %29 {strides = array<i32>} : memref<32x128xf32, #tpu.memory_space<vmem>>, vector<32x128xf32>,
    } else {
    }
    return
  }
  func.func @transform_0(%arg0: i32, %arg1: i32) -> (i32, i32, i32) {
    %c0_i32 = arith.constant 0 : i32
    %c0_i32_0 = arith.constant 0 : i32
    return %arg0, %arg1, %c0_i32 : i32, i32, i32
  }
  func.func @transform_1(%arg0: i32, %arg1: i32) -> (i32, i32, i32) {
    %c0_i32 = arith.constant 0 : i32
    %c0_i32_0 = arith.constant 0 : i32
    return %arg0, %arg1, %c0_i32 : i32, i32, i32
  }
  func.func @transform_2(%arg0: i32, %arg1: i32) -> (i32, i32) {
    %c0_i32 = arith.constant 0 : i32
    %c0_i32_0 = arith.constant 0 : i32
    %c0_i32_1 = arith.constant 0 : i32
    return %c0_i32, %c0_i32_0 : i32, i32
  }
  func.func @transform_3(%arg0: i32, %arg1: i32) -> (i32, i32) {
    %c0_i32 = arith.constant 0 : i32
    %c0_i32_0 = arith.constant 0 : i32
    %c0_i32_1 = arith.constant 0 : i32
    return %c0_i32, %c0_i32_0 : i32, i32
  }
  func.func @transform_4(%arg0: i32, %arg1: i32) -> (i32, i32) {
    %c0_i32 = arith.constant 0 : i32
    %c0_i32_0 = arith.constant 0 : i32
    return %arg0, %c0_i32 : i32, i32
  }
}

</mosaic_0001>

<bundles_post_ra>
// kernel: tpu_custom_call.1
= control target key start
LH: loop header
LB: loop body
LE: loop exit
PB: predicated region body
PF: predicated region fallthrough
CT: control target
= control target key end

     0   :  { %9 = vsyncpa [#allocation5], 0  ;;  %s2123_s0 = inlined_call_operand.vmem [shape: f32[50,8,32], index: 0, kind: input, shape index: {}]   ;;  %s2124_s1 = inlined_call_operand.vmem [shape: s32[50,8,1], index: 1, kind: input, shape index: {}]   ;;  %s2125_s2 = inlined_call_operand.vmem [shape: f32[32,128], index: 2, kind: input, shape index: {}]   ;;  %s2126_s3 = inlined_call_operand.vmem [shape: f32[1,128], index: 3, kind: input, shape index: {}]   ;;  %s2127_s4 = inlined_call_operand.hbm [shape: f32[50,128], index: 4, kind: output, shape index: {}]  }
   0x1   :  { %11 = vsyncpa [#allocation5 + $0x1], 0  ;;  %s1710_s15 = smov 0   ;;  %s1712_s16 = smov 0  }
   0x2   :  { %s1714_s17 = smov 0   ;;  %s1716_s18 = smov 0  }
   0x3   :  { %s1718_s19 = smov 0   ;;  %s1720_s20 = smov 0  }
   0x4 LB: > { %s1473_s21 = sadd.s32 4294967295, %s1678_s20   ;;  %s1474_s22 = sadd.s32 4294967294, %s1678_s20   ;;  %s1678_s20 = sphi %s1720_s20, %s17_s20   ;;  %s1674_s19 = sphi %s1718_s19, %s2134_s19   ;;  %s1670_s18 = sphi %s1716_s18, %s2133_s18   ;;  %s1666_s17 = sphi %s1714_s17, %s2132_s17   ;;  %s1662_s16 = sphi %s1712_s16, %s2131_s16   ;;  %s1658_s15 = sphi %s1710_s15, %s2130_s15  }
   0x5   : > { %s29_s23 = sadd.s32 1, %s1674_s19  ;;  %s134_s24 = sadd.s32 1, %s1666_s17 }
   0x6   : > { %p31_p0 = scmp.ge.s32.totalorder %s29_s23, 2  ;;  %p144_p1 = scmp.ne.s32.totalorder %s1666_s17, %s1662_s16 }
   0x7   : > { %p145_p2 = scmp.eq.s32.totalorder %s1473_s21, 1  ;;  %p150_p3 = scmp.ne.s32.totalorder %s1662_s16, %s1658_s15 }
   0x8   : > { %s2136_s23 = smov (%p31_p0, %s29_s23), 0  ;;  %p151_p5 = scmp.eq.s32.totalorder %s1474_s22, 1 }
   0x9   : > { %p1750_p4 = por %p145_p2, %p144_p1  ;;  %s131_s26 = ssub.s32 %s1674_s19, %s2136_s23 }
   0xa   : > { %p1477_p6 = scmp.ge.s32.totalorder %s1678_s20, 1  ;;  %p132_p7 = scmp.eq.s32.totalorder %s131_s26, 0 }
   0xb   : > { %p1757_p8 = por %p151_p5, %p150_p3  ;;  %p215_p9 = scmp.lt.s32.totalorder %s1678_s20, 3 }
   0xc   : > { %s1763_s28 = scalar_select %p132_p7, %s1666_s17, %s134_s24  }
   0xd   : > { %p216_p10 = pnand %p1477_p6, %p215_p9 }
   0xe   : > { %s1479_s29 = sshll.u32 (!%p216_p10), %s1670_s18, 5  ;;  %v1680_v0 = vmov (!%p216_p10), 0   ;;  %vm308_vm0 = vcmask (!%p216_p10), 7168   ;;  %vm303_vm1 = vcmask (!%p216_p10), 261120   ;;  %v1681_v1 = vmov (!%p216_p10), 0.0  }
   0xf   : > { %219 = sbr.rel (%p216_p10) target bundleno = 500 (0x1f4), region = 36  ;;  %1591 = vset.pattern.permute.xlu1 (!%p216_p10), %v1680_v0  ;;  %1590 = vset.pattern.permute.xlu0 (!%p216_p10), %v1680_v0  ;;  %p265_p11 = scmp.lt.s32.totalorder (!%p216_p10), %s1479_s29, 49  ;;  %309 = vst.msk [vmem:[#allocation3] sm:$0xff] (!%p216_p10), %vm308_vm0, %v1681_v1  ;;  %310 = vst.msk [vmem:[#allocation3 + $0x8] sm:$0xff] (!%p216_p10), %vm308_vm0, %v1681_v1  ;;  %vm638_vm2 = vcmask (!%p216_p10), 1041409   ;;  %vm640_vm3 = vcmask (!%p216_p10), 1042434  }
  0x10   : > { %311 = vst.msk [vmem:[#allocation3 + $0x10] sm:$0xff] (!%p216_p10), %vm308_vm0, %v1681_v1  ;;  %312 = vst.msk [vmem:[#allocation3 + $0x18] sm:$0xff] (!%p216_p10), %vm308_vm0, %v1681_v1  ;;  %vm642_vm4 = vcmask (!%p216_p10), 1043459   ;;  %vm644_vm5 = vcmask (!%p216_p10), 1044484   ;;  %vm646_vm6 = vcmask (!%p216_p10), 1045509   ;;  %vm648_vm7 = vcmask (!%p216_p10), 1046534  }
  0x11   : > { %304 = vst.msk [vmem:[#allocation2] sm:$0xff] (!%p216_p10), %vm303_vm1, %v1681_v1  ;;  %305 = vst.msk [vmem:[#allocation2 + $0x8] sm:$0xff] (!%p216_p10), %vm303_vm1, %v1681_v1  ;;  %vm650_vm8 = vcmask (!%p216_p10), 1047559  }
  0x12   : > { %306 = vst.msk [vmem:[#allocation2 + $0x10] sm:$0xff] (!%p216_p10), %vm303_vm1, %v1681_v1  ;;  %307 = vst.msk [vmem:[#allocation2 + $0x18] sm:$0xff] (!%p216_p10), %vm303_vm1, %v1681_v1 }
  0x16   : > { %s2138_s29 = smov (!%p265_p11, %s1479_s29), 49  ;;  %s1489_s9 = sshll.u32 (%p1750_p4), %s1670_s18, 2 }
  0x17   : > { %s1480_s30 = sshll.u32 %s2138_s29, 3  ;;  %s257_s29 = sand.u32 1, %s1662_s16  }
  0x18   : > { %s1782_s7 = scalar_lea.vmem %s2124_s1, %s1480_s30  ;;  %s1931_s26 = scalar_lea.vmem %s2123_s0, %s1480_s30 }
  0x19   : > { %v329_v2 = vld [vmem:[%s1782_s7 + $0x80] sm:$0xff]  ;;  %v330_v4 = vld [vmem:[%s1782_s7 + $0x88] sm:$0xff]  ;;  %v315_v10 = vld [vmem:[%s1782_s7 + $0x10] sm:$0xff]  ;;  %s1478_s30 = sshll.u32 %s257_s29, 5  ;;  %s2058_s8 = scalar_lea.sflag [#allocation5], %s257_s29 }
  0x1a   : > { %v313_v3 = vld [vmem:[%s1782_s7] sm:$0xff]  ;;  %v361_v5 = vcvt.s32.f32 %v329_v2  ;;  %v362_v7 = vcvt.s32.f32 %v330_v4  ;;  %v314_v8 = vld [vmem:[%s1782_s7 + $0x8] sm:$0xff]  ;;  %v347_v13 = vcvt.s32.f32 %v315_v10  ;;  %v331_v14 = vld [vmem:[%s1782_s7 + $0x90] sm:$0xff]  ;;  %s1374_s10 = ssub.s32 (%p1750_p4), 7, %s1489_s9 }
  0x1b   : > { %v345_v6 = vcvt.s32.f32 %v313_v3  ;;  %v321_v9 = vld [vmem:[%s1782_s7 + $0x40] sm:$0xff]  ;;  %v346_v11 = vcvt.s32.f32 %v314_v8  ;;  %v363_v18 = vcvt.s32.f32 %v331_v14  ;;  %v322_v23 = vld [vmem:[%s1782_s7 + $0x48] sm:$0xff]  ;;  %v323_v4 = vld [vmem:[%s1782_s7 + $0x50] sm:$0xff]  ;;  %p1375_p12 = scmp.lt.s32.totalorder (%p1750_p4), %s1374_s10, 4 }
  0x1c   : > { %v353_v12 = vcvt.s32.f32 %v321_v9  ;;  %799 = vperm.xlu1 %1591, %v361_v5   ;;  %v494_v15 = vsel %vm308_vm0, %v361_v5, 0.0  ;;  %v501_v17 = vsel %vm308_vm0, %v362_v7, 0.0  ;;  %v396_v26 = vsel %vm308_vm0, %v347_v13, 0.0  ;;  %v338_v60 = vld [vmem:[%s1782_s7 + $0xc8] sm:$0xff]  ;;  %v337_v61 = vld [vmem:[%s1782_s7 + $0xc0] sm:$0xff]  ;;  %v316_v5 = vld [vmem:[%s1782_s7 + $0x18] sm:$0xff] }
  0x1d   : > { %719 = vperm.xlu0 %1590, %v345_v6   ;;  %v382_v16 = vsel %vm308_vm0, %v345_v6, 0.0  ;;  %v495_v19 = vrot.slane %v494_v15, 4  ;;  %v502_v21 = vrot.slane %v501_v17, 4  ;;  %v389_v22 = vsel %vm308_vm0, %v346_v11, 0.0 }
  0x1e   : > { %v383_v20 = vrot.slane %v382_v16, 4  ;;  %v390_v24 = vrot.slane %v389_v22, 4  ;;  %v438_v25 = vsel %vm308_vm0, %v353_v12, 0.0  ;;  %v508_v27 = vsel %vm308_vm0, %v363_v18, 0.0 }
  0x1f   : > { %v496_v28 = vadd.f32 %v495_v19, %v494_v15  ;;  %v503_v30 = vadd.f32 %v502_v21, %v501_v17  ;;  %v439_v31 = vrot.slane %v438_v25, 4  ;;  %v397_v33 = vrot.slane %v396_v26, 4  ;;  %v324_v21 = vld [vmem:[%s1782_s7 + $0x58] sm:$0xff] }
  0x20   : > { %v384_v29 = vadd.f32 %v383_v20, %v382_v16  ;;  %804 = vperm.xlu1 %1591, %v362_v7   ;;  %v391_v32 = vadd.f32 %v390_v24, %v389_v22  ;;  %v509_v34 = vrot.slane %v508_v27, 4  ;;  %v354_v35 = vcvt.s32.f32 %v322_v23  ;;  %v332_v20 = vld [vmem:[%s1782_s7 + $0x98] sm:$0xff] }
  0x21   : > { %724 = vperm.xlu0 %1590, %v346_v11   ;;  %v497_v36 = vrot.slane %v496_v28, 2  ;;  %v504_v38 = vrot.slane %v503_v30, 2  ;;  %v440_v39 = vadd.f32 %v439_v31, %v438_v25  ;;  %v398_v41 = vadd.f32 %v397_v33, %v396_v26  ;;  %v339_v11 = vld [vmem:[%s1782_s7 + $0xd0] sm:$0xff] }
  0x22   : > { %v385_v37 = vrot.slane %v384_v29, 2  ;;  %v392_v40 = vrot.slane %v391_v32, 2  ;;  %v510_v42 = vadd.f32 %v509_v34, %v508_v27  ;;  %v445_v43 = vsel %vm308_vm0, %v354_v35, 0.0 }
  0x23   : > { %v498_v44 = vadd.f32 %v497_v36, %v496_v28  ;;  %v505_v46 = vadd.f32 %v504_v38, %v503_v30  ;;  %v441_v47 = vrot.slane %v440_v39, 2  ;;  %v399_v49 = vrot.slane %v398_v41, 2  ;;  %v317_v38 = vld [vmem:[%s1782_s7 + $0x20] sm:$0xff] }
  0x24   : > { %v386_v45 = vadd.f32 %v385_v37, %v384_v29  ;;  %v393_v48 = vadd.f32 %v392_v40, %v391_v32  ;;  %759 = vperm.xlu1 %1591, %v353_v12   ;;  %v511_v50 = vrot.slane %v510_v42, 2  ;;  %v446_v51 = vrot.slane %v445_v43, 4 }
  0x25   : > { %729 = vperm.xlu0 %1590, %v347_v13   ;;  %v499_v52 = vrot.slane %v498_v44, 1  ;;  %v506_v54 = vrot.slane %v505_v46, 1  ;;  %v442_v55 = vadd.f32 %v441_v47, %v440_v39  ;;  %v400_v57 = vadd.f32 %v399_v49, %v398_v41 }
  0x26   : > { %v387_v53 = vrot.slane %v386_v45, 1  ;;  %v394_v56 = vrot.slane %v393_v48, 1  ;;  %v1800_v58 = vadd.f32 %v511_v50, %v510_v42  ;;  %v447_v59 = vadd.f32 %v446_v51, %v445_v43 }
  0x27   : > { %v500_v62 = vadd.f32 %v499_v52, %v498_v44  ;;  %v507_v63 = vadd.f32 %v506_v54, %v505_v46  ;;  %v443_v2 = vrot.slane %v442_v55, 1  ;;  %v370_v6 = vcvt.s32.f32 %v338_v60  ;;  %v340_v60 = vld [vmem:[%s1782_s7 + $0xd8] sm:$0xff] }
  0x28   : > { %v388_v0 = vadd.f32 %v387_v53, %v386_v45  ;;  %v395_v1 = vadd.f32 %v394_v56, %v393_v48  ;;  %809 = vperm.xlu1 %1591, %v363_v18   ;;  %v448_v3 = vrot.slane %v447_v59, 2  ;;  %v369_v7 = vcvt.s32.f32 %v337_v61 }
  0x29   : > { %764 = vperm.xlu0 %1590, %v354_v35   ;;  %v1807_v8 = vsel %vm638_vm2, %v507_v63, %v500_v62  ;;  %v401_v9 = vrot.slane %v400_v57, 1  ;;  %v513_v10 = vrot.slane %v1800_v58, 1  ;;  %v557_v12 = vsel %vm308_vm0, %v370_v6, 0.0 }
  0x2a   : > { %v550_v13 = vsel %vm308_vm0, %v369_v7, 0.0  ;;  %v355_v14 = vcvt.s32.f32 %v323_v4  ;;  %v348_v15 = vcvt.s32.f32 %v316_v5  ;;  %v1814_v16 = vsel %vm638_vm2, %v395_v1, %v388_v0 }
  0x2b   : > { %v1816_v17 = vadd.f32 %v443_v2, %v442_v55  ;;  %v449_v18 = vadd.f32 %v448_v3, %v447_v59  ;;  %v558_v19 = vrot.slane %v557_v12, 4  ;;  %v551_v22 = vrot.slane %v550_v13, 4 }
  0x2c   : > { %844 = vperm.xlu1 %1591, %v370_v6   ;;  %v452_v23 = vsel %vm308_vm0, %v355_v14, 0.0  ;;  %v403_v24 = vsel %vm308_vm0, %v348_v15, 0.0  ;;  %v371_v25 = vcvt.s32.f32 %v339_v11  ;;  %v402_v26 = vadd.f32 %v401_v9, %v400_v57 }
  0x2d   : > { %839 = vperm.xlu0 %1590, %v369_v7   ;;  %v559_v27 = vadd.f32 %v558_v19, %v557_v12  ;;  %v453_v28 = vrot.slane %v452_v23, 4  ;;  %v404_v29 = vrot.slane %v403_v24, 4  ;;  %v552_v30 = vadd.f32 %v551_v22, %v550_v13  ;;  %v318_v19 = vld [vmem:[%s1782_s7 + $0x28] sm:$0xff] }
  0x2e   : > { %v564_v31 = vsel %vm308_vm0, %v371_v25, 0.0  ;;  %v364_v32 = vcvt.s32.f32 %v332_v20  ;;  %v356_v33 = vcvt.s32.f32 %v324_v21  ;;  %v450_v34 = vrot.slane %v449_v18, 1 }
  0x2f   : > { %v560_v35 = vrot.slane %v559_v27, 2  ;;  %v454_v36 = vadd.f32 %v453_v28, %v452_v23  ;;  %v405_v37 = vadd.f32 %v404_v29, %v403_v24  ;;  %v553_v39 = vrot.slane %v552_v30, 2 }
  0x30   : > { %769 = vperm.xlu1 %1591, %v355_v14   ;;  %v565_v40 = vrot.slane %v564_v31, 4  ;;  %v515_v41 = vsel %vm308_vm0, %v364_v32, 0.0  ;;  %v459_v42 = vsel %vm308_vm0, %v356_v33, 0.0  ;;  %v349_v50 = vcvt.s32.f32 %v317_v38 }
  0x31   : > { %734 = vperm.xlu0 %1590, %v348_v15   ;;  %v561_v43 = vadd.f32 %v560_v35, %v559_v27  ;;  %v455_v44 = vrot.slane %v454_v36, 2  ;;  %v406_v45 = vrot.slane %v405_v37, 2  ;;  %v516_v46 = vrot.slane %v515_v41, 4  ;;  %v333_v15 = vld [vmem:[%s1782_s7 + $0xa0] sm:$0xff] }
  0x32   : > { %v554_v47 = vadd.f32 %v553_v39, %v552_v30  ;;  %v566_v48 = vadd.f32 %v565_v40, %v564_v31  ;;  %v460_v49 = vrot.slane %v459_v42, 4  ;;  %v410_v59 = vsel %vm308_vm0, %v349_v50, 0.0 }
  0x33   : > { %v562_v51 = vrot.slane %v561_v43, 1  ;;  %v456_v52 = vadd.f32 %v455_v44, %v454_v36  ;;  %v407_v53 = vadd.f32 %v406_v45, %v405_v37  ;;  %v517_v54 = vadd.f32 %v516_v46, %v515_v41  ;;  %v326_v37 = vld [vmem:[%s1782_s7 + $0x68] sm:$0xff] }
  0x34   : > { %849 = vperm.xlu1 %1591, %v371_v25   ;;  %v555_v55 = vrot.slane %v554_v47, 1  ;;  %v567_v56 = vrot.slane %v566_v48, 2  ;;  %v461_v57 = vadd.f32 %v460_v49, %v459_v42  ;;  %v451_v61 = vadd.f32 %v450_v34, %v449_v18  ;;  %v325_v18 = vld [vmem:[%s1782_s7 + $0x60] sm:$0xff] }
  0x35   : > { %814 = vperm.xlu0 %1590, %v364_v32   ;;  %v457_v62 = vrot.slane %v456_v52, 1  ;;  %v408_v63 = vrot.slane %v407_v53, 1  ;;  %v518_v0 = vrot.slane %v517_v54, 2  ;;  %v514_v1 = vadd.f32 %v513_v10, %v1800_v58  ;;  %v334_v32 = vld [vmem:[%s1782_s7 + $0xa8] sm:$0xff] }
  0x36   : > { %v568_v2 = vadd.f32 %v567_v56, %v566_v48  ;;  %v462_v3 = vrot.slane %v461_v57, 2  ;;  %v411_v4 = vrot.slane %v410_v59, 4  ;;  %v563_v5 = vadd.f32 %v562_v51, %v561_v43 }
  0x37   : > { %v556_v6 = vadd.f32 %v555_v55, %v554_v47  ;;  %v519_v7 = vadd.f32 %v518_v0, %v517_v54  ;;  %v372_v9 = vcvt.s32.f32 %v340_v60  ;;  %v458_v11 = vadd.f32 %v457_v62, %v456_v52 }
  0x38   : > { %774 = vperm.xlu1 %1591, %v356_v33   ;;  %v409_v12 = vadd.f32 %v408_v63, %v407_v53  ;;  %v569_v13 = vrot.slane %v568_v2, 1  ;;  %v412_v14 = vadd.f32 %v411_v4, %v410_v59  ;;  %v641_v58 = vsel %vm640_vm3, %v402_v26, %v1814_v16  ;;  %v319_v59 = vld [vmem:[%s1782_s7 + $0x30] sm:$0xff] }
  0x39   : > { %739 = vperm.xlu0 %1590, %v349_v50   ;;  %v652_v10 = vsel %vm638_vm2, %v451_v61, %v1816_v17  ;;  %v463_v20 = vadd.f32 %v462_v3, %v461_v57  ;;  %v571_v21 = vsel %vm308_vm0, %v372_v9, 0.0  ;;  %v1839_v22 = vsel %vm640_vm3, %v514_v1, %v1807_v8  ;;  %v341_v8 = vld [vmem:[%s1782_s7 + $0xe0] sm:$0xff] }
  0x3a   : > { %v520_v23 = vrot.slane %v519_v7, 1  ;;  %v413_v24 = vrot.slane %v412_v14, 2  ;;  %v572_v25 = vrot.slane %v571_v21, 4  ;;  %v666_v27 = vsel %vm638_vm2, %v563_v5, %v556_v6 }
  0x3b   : > { %v365_v16 = vcvt.s32.f32 %v333_v15  ;;  %v357_v26 = vcvt.s32.f32 %v325_v18  ;;  %v350_v28 = vcvt.s32.f32 %v318_v19  ;;  %v1843_v17 = vsel %vm640_vm3, %v458_v11, %v652_v10 }
  0x3c   : > { %854 = vperm.xlu1 %1591, %v372_v9   ;;  %v1846_v29 = vsel %vm642_vm4, %v409_v12, %v641_v58  ;;  %v570_v30 = vadd.f32 %v569_v13, %v568_v2  ;;  %v573_v31 = vadd.f32 %v572_v25, %v571_v21  ;;  %v464_v33 = vrot.slane %v463_v20, 1 }
  0x3d   : > { %v522_v34 = vsel %vm308_vm0, %v365_v16, 0.0  ;;  %819 = vperm.xlu0 %1590, %v365_v16   ;;  %v466_v35 = vsel %vm308_vm0, %v357_v26, 0.0  ;;  %v417_v36 = vsel %vm308_vm0, %v350_v28, 0.0  ;;  %v521_v38 = vadd.f32 %v520_v23, %v519_v7 }
  0x3e   : > { %v414_v39 = vadd.f32 %v413_v24, %v412_v14  ;;  %v574_v40 = vrot.slane %v573_v31, 2  ;;  %v523_v41 = vrot.slane %v522_v34, 4  ;;  %v467_v42 = vrot.slane %v466_v35, 4  ;;  %v342_v14 = vld [vmem:[%s1782_s7 + $0xe8] sm:$0xff] }
  0x3f   : > { %v418_v43 = vrot.slane %v417_v36, 4  ;;  %v373_v44 = vcvt.s32.f32 %v341_v8  ;;  %v366_v45 = vcvt.s32.f32 %v334_v32  ;;  %v667_v46 = vsel %vm640_vm3, %v570_v30, %v666_v27  ;;  %v335_v8 = vld [vmem:[%s1782_s7 + $0xb0] sm:$0xff] }
  0x40   : > { %779 = vperm.xlu1 %1591, %v357_v26   ;;  %v575_v47 = vadd.f32 %v574_v40, %v573_v31  ;;  %v524_v48 = vadd.f32 %v523_v41, %v522_v34  ;;  %v358_v49 = vcvt.s32.f32 %v326_v37  ;;  %v468_v50 = vadd.f32 %v467_v42, %v466_v35  ;;  %v327_v32 = vld [vmem:[%s1782_s7 + $0x70] sm:$0xff] }
  0x41   : > { %v419_v51 = vadd.f32 %v418_v43, %v417_v36  ;;  %744 = vperm.xlu0 %1590, %v350_v28   ;;  %v578_v52 = vsel %vm308_vm0, %v373_v44, 0.0  ;;  %v529_v53 = vsel %vm308_vm0, %v366_v45, 0.0  ;;  %v415_v54 = vrot.slane %v414_v39, 1 }
  0x42   : > { %v576_v55 = vrot.slane %v575_v47, 1  ;;  %v525_v56 = vrot.slane %v524_v48, 2  ;;  %v579_v57 = vrot.slane %v578_v52, 4  ;;  %v469_v60 = vrot.slane %v468_v50, 2 }
  0x43   : > { %v420_v61 = vrot.slane %v419_v51, 2  ;;  %v530_v62 = vrot.slane %v529_v53, 4  ;;  %v473_v63 = vsel %vm308_vm0, %v358_v49, 0.0  ;;  %v465_v0 = vadd.f32 %v464_v33, %v463_v20  ;;  %v320_v33 = vld [vmem:[%s1782_s7 + $0x38] sm:$0xff] }
  0x44   : > { %859 = vperm.xlu1 %1591, %v373_v44   ;;  %v526_v1 = vadd.f32 %v525_v56, %v524_v48  ;;  %v580_v2 = vadd.f32 %v579_v57, %v578_v52  ;;  %v474_v3 = vrot.slane %v473_v63, 4  ;;  %v470_v4 = vadd.f32 %v469_v60, %v468_v50  ;;  %v336_v48 = vld [vmem:[%s1782_s7 + $0xb8] sm:$0xff] }
  0x45   : > { %v421_v5 = vadd.f32 %v420_v61, %v419_v51  ;;  %v531_v6 = vadd.f32 %v530_v62, %v529_v53  ;;  %824 = vperm.xlu0 %1590, %v366_v45   ;;  %v351_v7 = vcvt.s32.f32 %v319_v59  ;;  %v416_v9 = vadd.f32 %v415_v54, %v414_v39  ;;  %v344_v53 = vld [vmem:[%s1782_s7 + $0xf8] sm:$0xff] }
  0x46   : > { %v527_v11 = vrot.slane %v526_v1, 1  ;;  %v581_v12 = vrot.slane %v580_v2, 2  ;;  %v475_v13 = vadd.f32 %v474_v3, %v473_v63  ;;  %v577_v15 = vadd.f32 %v576_v55, %v575_v47  ;;  %v343_v47 = vld [vmem:[%s1782_s7 + $0xf0] sm:$0xff] }
  0x47   : > { %v422_v18 = vrot.slane %v421_v5, 1  ;;  %v532_v19 = vrot.slane %v531_v6, 2  ;;  %v424_v58 = vsel %vm308_vm0, %v351_v7, 0.0  ;;  %v471_v10 = vrot.slane %v470_v4, 1 }
  0x48   : > { %784 = vperm.xlu1 %1591, %v358_v49   ;;  %v582_v20 = vadd.f32 %v581_v12, %v580_v2  ;;  %v476_v21 = vrot.slane %v475_v13, 2  ;;  %v425_v23 = vrot.slane %v424_v58, 4  ;;  %v661_v24 = vsel %vm642_vm4, %v521_v38, %v1839_v22 }
  0x49   : > { %v528_v25 = vadd.f32 %v527_v11, %v526_v1  ;;  %v533_v27 = vadd.f32 %v532_v19, %v531_v6  ;;  %749 = vperm.xlu0 %1590, %v351_v7   ;;  %v374_v16 = vcvt.s32.f32 %v342_v14  ;;  %v1865_v26 = vsel %vm642_vm4, %v465_v0, %v1843_v17 }
  0x4a   : > { %v423_v28 = vadd.f32 %v422_v18, %v421_v5  ;;  %v583_v30 = vrot.slane %v582_v20, 1  ;;  %v426_v31 = vadd.f32 %v425_v23, %v424_v58  ;;  %v645_v34 = vsel %vm644_vm5, %v416_v9, %v1846_v29 }
  0x4b   : > { %v668_v35 = vsel %vm642_vm4, %v577_v15, %v667_v46  ;;  %v1873_v22 = vadd.f32 %v476_v21, %v475_v13  ;;  %v585_v36 = vsel %vm308_vm0, %v374_v16, 0.0  ;;  %v1876_v17 = vadd.f32 %v471_v10, %v470_v4  ;;  %v328_v13 = vld [vmem:[%s1782_s7 + $0x78] sm:$0xff]  ;;  %s259_s7 = scalar_lea.vmem [#allocation4], %s1478_s30 }
  0x4c   : > { %864 = vperm.xlu1 %1591, %v374_v16   ;;  %v534_v37 = vrot.slane %v533_v27, 1  ;;  %v427_v38 = vrot.slane %v426_v31, 2  ;;  %v586_v39 = vrot.slane %v585_v36, 4  ;;  %v662_v40 = vsel %vm644_vm5, %v528_v25, %v661_v24 }
  0x4d   : > { %v367_v41 = vcvt.s32.f32 %v335_v8  ;;  %v359_v29 = vcvt.s32.f32 %v327_v32  ;;  %v352_v42 = vcvt.s32.f32 %v320_v33  ;;  %v647_v43 = vsel %vm646_vm6, %v423_v28, %v645_v34 }
  0x4e   : > { %v584_v44 = vadd.f32 %v583_v30, %v582_v20  ;;  %v428_v45 = vadd.f32 %v427_v38, %v426_v31  ;;  %v587_v46 = vadd.f32 %v586_v39, %v585_v36  ;;  %v478_v49 = vrot.slane %v1873_v22, 1 }
  0x4f   : > { %v536_v50 = vsel %vm308_vm0, %v367_v41, 0.0  ;;  %829 = vperm.xlu0 %1590, %v367_v41   ;;  %v480_v51 = vsel %vm308_vm0, %v359_v29, 0.0  ;;  %v431_v52 = vsel %vm308_vm0, %v352_v42, 0.0  ;;  %v535_v54 = vadd.f32 %v534_v37, %v533_v27  ;;  %v377_v41 = vld [vmem:[#allocation3] sm:$0xff] }
  0x50   : > { %789 = vperm.xlu1 %1591, %v359_v29   ;;  %v429_v55 = vrot.slane %v428_v45, 1  ;;  %v588_v56 = vrot.slane %v587_v46, 2  ;;  %v537_v57 = vrot.slane %v536_v50, 4  ;;  %v481_v59 = vrot.slane %v480_v51, 4 }
  0x51   : > { %v432_v60 = vrot.slane %v431_v52, 4  ;;  %v375_v61 = vcvt.s32.f32 %v343_v47  ;;  %v368_v62 = vcvt.s32.f32 %v336_v48  ;;  %v669_v63 = vsel %vm644_vm5, %v584_v44, %v668_v35 }
  0x52   : > { %v589_v0 = vadd.f32 %v588_v56, %v587_v46  ;;  %v538_v1 = vadd.f32 %v537_v57, %v536_v50  ;;  %v376_v2 = vcvt.s32.f32 %v344_v53  ;;  %v482_v3 = vadd.f32 %v481_v59, %v480_v51 }
  0x53   : > { %v433_v4 = vadd.f32 %v432_v60, %v431_v52  ;;  %754 = vperm.xlu0 %1590, %v352_v42   ;;  %v592_v5 = vsel %vm308_vm0, %v375_v61, 0.0  ;;  %v543_v6 = vsel %vm308_vm0, %v368_v62, 0.0  ;;  %v430_v7 = vadd.f32 %v429_v55, %v428_v45  ;;  %v379_v55 = vld [vmem:[#allocation3 + $0x10] sm:$0xff] }
  0x54   : > { %869 = vperm.xlu1 %1591, %v375_v61   ;;  %v590_v9 = vrot.slane %v589_v0, 1  ;;  %v539_v11 = vrot.slane %v538_v1, 2  ;;  %v593_v12 = vrot.slane %v592_v5, 4  ;;  %v483_v14 = vrot.slane %v482_v3, 2 }
  0x55   : > { %v434_v15 = vrot.slane %v433_v4, 2  ;;  %v544_v18 = vrot.slane %v543_v6, 4  ;;  %v599_v19 = vsel %vm308_vm0, %v376_v2, 0.0  ;;  %v663_v58 = vsel %vm646_vm6, %v535_v54, %v662_v40 }
  0x56   : > { %v540_v10 = vadd.f32 %v539_v11, %v538_v1  ;;  %v594_v20 = vadd.f32 %v593_v12, %v592_v5  ;;  %v600_v21 = vrot.slane %v599_v19, 4  ;;  %v484_v23 = vadd.f32 %v483_v14, %v482_v3  ;;  %v378_v3 = vld [vmem:[#allocation3 + $0x8] sm:$0xff] }
  0x57   : > { %v435_v24 = vadd.f32 %v434_v15, %v433_v4  ;;  %v545_v25 = vadd.f32 %v544_v18, %v543_v6  ;;  %834 = vperm.xlu0 %1590, %v368_v62   ;;  %v360_v27 = vcvt.s32.f32 %v328_v13  ;;  %v649_v16 = vsel %vm648_vm7, %v430_v7, %v647_v43 }
  0x58   : > { %874 = vperm.xlu1 %1591, %v376_v2   ;;  %v541_v28 = vrot.slane %v540_v10, 1  ;;  %v595_v30 = vrot.slane %v594_v20, 2  ;;  %v601_v31 = vadd.f32 %v600_v21, %v599_v19  ;;  %v591_v8 = vadd.f32 %v590_v9, %v589_v0  ;;  %v1253_v19 = vld [vmem:[%s2125_s2] sm:$0xff]  ;;  %v1256_v21 = vld [vmem:[%s2125_s2 + $0x18] sm:$0xff] }
  0x59   : > { %v436_v32 = vrot.slane %v435_v24, 1  ;;  %v546_v33 = vrot.slane %v545_v25, 2  ;;  %v487_v34 = vsel %vm308_vm0, %v360_v27, 0.0  ;;  %v655_v39 = vsel %vm644_vm5, %v1876_v17, %v1865_v26 }
  0x5a   : > { %v542_v35 = vadd.f32 %v541_v28, %v540_v10  ;;  %v596_v36 = vadd.f32 %v595_v30, %v594_v20  ;;  %v602_v37 = vrot.slane %v601_v31, 2  ;;  %v488_v38 = vrot.slane %v487_v34, 4  ;;  %v1255_v20 = vld [vmem:[%s2125_s2 + $0x10] sm:$0xff] }
  0x5b   : > { %v485_v40 = vrot.slane %v484_v23, 1  ;;  %v437_v29 = vadd.f32 %v436_v32, %v435_v24  ;;  %v547_v42 = vadd.f32 %v546_v33, %v545_v25  ;;  %794 = vperm.xlu0 %1590, %v360_v27   ;;  %v479_v43 = vadd.f32 %v478_v49, %v1873_v22  ;;  %v380_v49 = vld [vmem:[#allocation3 + $0x18] sm:$0xff]  ;;  %v701_v24 = vld [vmem:[%s1931_s26 + $0x80] sm:$0xff] }
  0x5c   : > { %v597_v44 = vrot.slane %v596_v36, 1  ;;  %v603_v45 = vadd.f32 %v602_v37, %v601_v31  ;;  %v489_v46 = vadd.f32 %v488_v38, %v487_v34  ;;  %v670_v47 = vsel %vm646_vm6, %v591_v8, %v669_v63  ;;  %v685_v25 = vld [vmem:[%s1931_s26] sm:$0xff]  ;;  %v702_v31 = vld [vmem:[%s1931_s26 + $0x88] sm:$0xff] }
  0x5d   : > { %v664_v48 = vsel %vm648_vm7, %v542_v35, %v663_v58  ;;  %v651_v50 = vsel %vm650_vm8, %v437_v29, %v649_v16  ;;  %v548_v51 = vrot.slane %v547_v42, 1  ;;  %v486_v54 = vadd.f32 %v485_v40, %v484_v23  ;;  %v1254_v58 = vld [vmem:[%s2125_s2 + $0x8] sm:$0xff]  ;;  %v687_v40 = vld [vmem:[%s1931_s26 + $0x10] sm:$0xff] }
  0x5e   : > { %v677_v26 = vadd.f32 %v651_v50, %v377_v41  ;;  %v598_v17 = vadd.f32 %v597_v44, %v596_v36  ;;  %v604_v52 = vrot.slane %v603_v45, 1  ;;  %v490_v53 = vrot.slane %v489_v46, 2  ;;  %v686_v8 = vld [vmem:[%s1931_s26 + $0x8] sm:$0xff] }
  0x5f   : > { %v549_v56 = vadd.f32 %v548_v51, %v547_v42  ;;  %v656_v57 = vsel %vm646_vm6, %v479_v43, %v655_v39  ;;  %v1520_v10 = vpack.c.bf16 %v1254_v58, %v1253_v19  ;;  %v1524_v23 = vpack.c.bf16 %v1256_v21, %v1255_v20  ;;  %v693_v39 = vld [vmem:[%s1931_s26 + $0x40] sm:$0xff]  ;;  %v695_v20 = vld [vmem:[%s1931_s26 + $0x50] sm:$0xff]  ;;  %v688_v21 = vld [vmem:[%s1931_s26 + $0x18] sm:$0xff] }
  0x60   : > { %681 = vst.msk [vmem:[#allocation3] sm:$0xff] %vm308_vm0, %v677_v26  ;;  %v671_v22 = vsel %vm648_vm7, %v598_v17, %v670_v47  ;;  %v605_v59 = vadd.f32 %v604_v52, %v603_v45  ;;  %v491_v60 = vadd.f32 %v490_v53, %v489_v46  ;;  %v657_v1 = vsel %vm648_vm7, %v486_v54, %v656_v57  ;;  %v703_v26 = vld [vmem:[%s1931_s26 + $0x90] sm:$0xff]  ;;  %v694_v17 = vld [vmem:[%s1931_s26 + $0x48] sm:$0xff] }
  0x61   : > { %v665_v61 = vsel %vm650_vm8, %v549_v56, %v664_v48  ;;  %1521 = vmatprep.subr.bf16.mxu0 %v1520_v10  ;;  %1528 = vmatprep.subr.bf16.mxu1 %v1520_v10 }
  0x62   : > { %v679_v62 = vadd.f32 %v665_v61, %v379_v55  ;;  %v672_v63 = vsel %vm650_vm8, %v605_v59, %v671_v22  ;;  %v492_v0 = vrot.slane %v491_v60, 1  ;;  %1523 = vmatpush3.bf16.msra.mxu0 %v1520_v10  ;;  %1530 = vmatpush3.bf16.msra.mxu1 %v1520_v10 }
  0x63   : > { %v680_v2 = vadd.f32 %v672_v63, %v380_v49  ;;  %1525 = vmatprep.subr.bf16.mxu0 %v1524_v23  ;;  %1529 = vmatprep.subr.bf16.mxu1 %v1524_v23  ;;  %v710_v63 = vld [vmem:[%s1931_s26 + $0xc8] sm:$0xff] }
  0x64   : > { %683 = vst.msk [vmem:[#allocation3 + $0x10] sm:$0xff] %vm308_vm0, %v679_v62  ;;  %v493_v4 = vadd.f32 %v492_v0, %v491_v60  ;;  %v709_v0 = vld [vmem:[%s1931_s26 + $0xc0] sm:$0xff] }
  0x65   : > { %684 = vst.msk [vmem:[#allocation3 + $0x18] sm:$0xff] %vm308_vm0, %v680_v2 }
  0x66   : > { %v658_v5 = vsel %vm650_vm8, %v493_v4, %v657_v1  ;;  %1527 = vmatpush3.bf16.msra.mxu0 %v1524_v23  ;;  %1531 = vmatpush3.bf16.msra.mxu1 %v1524_v23 }
  0x67   : > { %v678_v6 = vadd.f32 %v658_v5, %v378_v3  ;;  %v1217_v7 = vld [vmem:[#allocation3] sm:$0xff] }
  0x68   : > { %v1221_v9 = vmax.f32 %v1217_v7, 1e-09 }
  0x69   : > { %682 = vst.msk [vmem:[#allocation3 + $0x8] sm:$0xff] %vm308_vm0, %v678_v6 }
  0x6a   : > { %1227 = vperm.xlu0 %1590, %v1221_v9  }
  0x6b   : > { %v1219_v11 = vld [vmem:[#allocation3 + $0x10] sm:$0xff] }
  0x6c   : > { %v1223_v12 = vmax.f32 %v1219_v11, 1e-09  ;;  %v1220_v13 = vld [vmem:[#allocation3 + $0x18] sm:$0xff] }
  0x6d   : > { %v1224_v14 = vmax.f32 %v1220_v13, 1e-09 }
  0x6e   : > { %1237 = vperm.xlu1 %1591, %v1223_v12  }
  0x70   : > { %v1218_v15 = vld [vmem:[#allocation3 + $0x8] sm:$0xff] }
  0x71   : > { %v1222_v18 = vmax.f32 %v1218_v15, 1e-09 }
  0x72   : > { %1242 = vperm.xlu1 %1591, %v1224_v14  }
  0x73   : > { %1232 = vperm.xlu0 %1590, %v1222_v18  }
  0x9b   : > { %v800_v27 = vpop.permute.xlu1 %799 }
  0x9c   : > { %v720_v16 = vpop.permute.xlu0 %719  ;;  %v893_v28 = vmul.f32 %v800_v27, %v701_v24 }
  0x9d   : > { %v877_v30 = vmul.f32 %v720_v16, %v685_v25 }
  0x9e   : > { %v1026_v32 = vsel %vm303_vm1, %v893_v28, 0.0 }
  0x9f   : > { %v1027_v33 = vrot.slane %v1026_v32, 4  ;;  %v914_v34 = vsel %vm303_vm1, %v877_v30, 0.0  ;;  %v805_v35 = vpop.permute.xlu1 %804 }
  0xa0   : > { %v725_v36 = vpop.permute.xlu0 %724  ;;  %v894_v37 = vmul.f32 %v805_v35, %v702_v31  ;;  %v915_v41 = vrot.slane %v914_v34, 4 }
  0xa1   : > { %v878_v38 = vmul.f32 %v725_v36, %v686_v8  ;;  %v1028_v43 = vadd.f32 %v1027_v33, %v1026_v32 }
  0xa2   : > { %v1033_v29 = vsel %vm303_vm1, %v894_v37, 0.0  ;;  %v916_v52 = vadd.f32 %v915_v41, %v914_v34 }
  0xa3   : > { %v921_v42 = vsel %vm303_vm1, %v878_v38, 0.0  ;;  %v1034_v44 = vrot.slane %v1033_v29, 4  ;;  %v760_v46 = vpop.permute.xlu1 %759  ;;  %v1029_v55 = vrot.slane %v1028_v43, 2 }
  0xa4   : > { %v922_v45 = vrot.slane %v921_v42, 4  ;;  %v730_v47 = vpop.permute.xlu0 %729  ;;  %v885_v48 = vmul.f32 %v760_v46, %v693_v39  ;;  %v917_v1 = vrot.slane %v916_v52, 2  ;;  %v711_v39 = vld [vmem:[%s1931_s26 + $0xd0] sm:$0xff] }
  0xa5   : > { %v879_v50 = vmul.f32 %v730_v47, %v687_v40  ;;  %v1035_v51 = vadd.f32 %v1034_v44, %v1033_v29  ;;  %v1030_v4 = vadd.f32 %v1029_v55, %v1028_v43 }
  0xa6   : > { %v970_v53 = vsel %vm303_vm1, %v885_v48, 0.0  ;;  %v923_v57 = vadd.f32 %v922_v45, %v921_v42  ;;  %v918_v19 = vadd.f32 %v917_v1, %v916_v52  ;;  %v704_v45 = vld [vmem:[%s1931_s26 + $0x98] sm:$0xff] }
  0xa7   : > { %v928_v54 = vsel %vm303_vm1, %v879_v50, 0.0  ;;  %v1036_v56 = vrot.slane %v1035_v51, 2  ;;  %v810_v22 = vpop.permute.xlu1 %809  ;;  %v971_v62 = vrot.slane %v970_v53, 4  ;;  %v1031_v23 = vrot.slane %v1030_v4, 1 }
  0xa8   : > { %v765_v49 = vpop.permute.xlu0 %764  ;;  %v929_v59 = vrot.slane %v928_v54, 4  ;;  %v895_v60 = vmul.f32 %v810_v22, %v703_v26  ;;  %v924_v6 = vrot.slane %v923_v57, 2  ;;  %v919_v36 = vrot.slane %v918_v19, 1  ;;  %v689_v22 = vld [vmem:[%s1931_s26 + $0x20] sm:$0xff] }
  0xa9   : > { %v886_v61 = vmul.f32 %v765_v49, %v694_v17  ;;  %v1037_v5 = vadd.f32 %v1036_v56, %v1035_v51  ;;  %v972_v15 = vadd.f32 %v971_v62, %v970_v53  ;;  %v1032_v40 = vadd.f32 %v1031_v23, %v1030_v4 }
  0xaa   : > { %v1040_v2 = vsel %vm303_vm1, %v895_v60, 0.0  ;;  %v930_v11 = vadd.f32 %v929_v59, %v928_v54  ;;  %v925_v25 = vadd.f32 %v924_v6, %v923_v57  ;;  %v696_v57 = vld [vmem:[%s1931_s26 + $0x58] sm:$0xff]  ;;  %v920_v49 = vadd.f32 %v919_v36, %v918_v19 }
  0xab   : > { %v977_v3 = vsel %vm303_vm1, %v886_v61, 0.0  ;;  %v845_v7 = vpop.permute.xlu1 %844  ;;  %v1041_v12 = vrot.slane %v1040_v2, 4  ;;  %v1038_v24 = vrot.slane %v1037_v5, 1  ;;  %v973_v32 = vrot.slane %v972_v15, 2 }
  0xac   : > { %v840_v9 = vpop.permute.xlu0 %839  ;;  %v902_v13 = vmul.f32 %v845_v7, %v710_v63  ;;  %v978_v18 = vrot.slane %v977_v3, 4  ;;  %v931_v28 = vrot.slane %v930_v11, 2  ;;  %v926_v41 = vrot.slane %v925_v25, 1 }
  0xad   : > { %v901_v14 = vmul.f32 %v840_v9, %v709_v0  ;;  %v1042_v30 = vadd.f32 %v1041_v12, %v1040_v2  ;;  %v1039_v46 = vadd.f32 %v1038_v24, %v1037_v5  ;;  %v974_v51 = vadd.f32 %v973_v32, %v972_v15 }
  0xae   : > { %v1089_v58 = vsel %vm303_vm1, %v902_v13, 0.0  ;;  %v979_v33 = vadd.f32 %v978_v18, %v977_v3  ;;  %v932_v47 = vadd.f32 %v931_v28, %v930_v11  ;;  %v927_v59 = vadd.f32 %v926_v41, %v925_v25 }
  0xaf   : > { %v1082_v10 = vsel %vm303_vm1, %v901_v14, 0.0  ;;  %v770_v27 = vpop.permute.xlu1 %769  ;;  %v1090_v31 = vrot.slane %v1089_v58, 4  ;;  %v1043_v48 = vrot.slane %v1042_v30, 2  ;;  %v1184_v9 = vsel %vm638_vm2, %v1039_v46, %v1032_v40  ;;  %v712_v14 = vld [vmem:[%s1931_s26 + $0xd8] sm:$0xff] }
  0xb0   : > { %v735_v16 = vpop.permute.xlu0 %734  ;;  %v1083_v8 = vrot.slane %v1082_v10, 4  ;;  %v887_v34 = vmul.f32 %v770_v27, %v695_v20  ;;  %v980_v26 = vrot.slane %v979_v33, 2  ;;  %v933_v0 = vrot.slane %v932_v47, 1  ;;  %v705_v20 = vld [vmem:[%s1931_s26 + $0xa0] sm:$0xff] }
  0xb1   : > { %v880_v35 = vmul.f32 %v735_v16, %v688_v21  ;;  %v1091_v37 = vadd.f32 %v1090_v31, %v1089_v58  ;;  %v1044_v1 = vadd.f32 %v1043_v48, %v1042_v30  ;;  %v975_v11 = vrot.slane %v974_v51, 1 }
  0xb2   : > { %v1084_v38 = vadd.f32 %v1083_v8, %v1082_v10  ;;  %v984_v29 = vsel %vm303_vm1, %v887_v34, 0.0  ;;  %v981_v4 = vadd.f32 %v980_v26, %v979_v33  ;;  %v934_v21 = vadd.f32 %v933_v0, %v932_v47 }
  0xb3   : > { %v935_v42 = vsel %vm303_vm1, %v880_v35, 0.0  ;;  %v850_v43 = vpop.permute.xlu1 %849  ;;  %v985_v50 = vrot.slane %v984_v29, 4  ;;  %v1092_v53 = vrot.slane %v1091_v37, 2  ;;  %v1045_v27 = vrot.slane %v1044_v1, 1 }
  0xb4   : > { %v815_v44 = vpop.permute.xlu0 %814  ;;  %v936_v17 = vrot.slane %v935_v42, 4  ;;  %v903_v52 = vmul.f32 %v850_v43, %v711_v39  ;;  %v1085_v54 = vrot.slane %v1084_v38, 2  ;;  %v982_v16 = vrot.slane %v981_v4, 1  ;;  %v697_v43 = vld [vmem:[%s1931_s26 + $0x60] sm:$0xff] }
  0xb5   : > { %v986_v55 = vadd.f32 %v985_v50, %v984_v29  ;;  %v896_v56 = vmul.f32 %v815_v44, %v704_v45  ;;  %v1093_v12 = vadd.f32 %v1092_v53, %v1091_v37  ;;  %v1170_v35 = vsel %vm638_vm2, %v927_v59, %v920_v49  ;;  %v690_v44 = vld [vmem:[%s1931_s26 + $0x28] sm:$0xff] }
  0xb6   : > { %v937_v60 = vadd.f32 %v936_v17, %v935_v42  ;;  %v1096_v61 = vsel %vm303_vm1, %v903_v52, 0.0  ;;  %v1086_v13 = vadd.f32 %v1085_v54, %v1084_v38  ;;  %v976_v40 = vadd.f32 %v975_v11, %v974_v51 }
  0xb7   : > { %v775_v62 = vpop.permute.xlu1 %774  ;;  %v987_v2 = vrot.slane %v986_v55, 2  ;;  %v1097_v3 = vrot.slane %v1096_v61, 4  ;;  %v1047_v5 = vsel %vm303_vm1, %v896_v56, 0.0  ;;  %v1094_v8 = vrot.slane %v1093_v12, 1 }
  0xb8   : > { %v740_v63 = vpop.permute.xlu0 %739  ;;  %v888_v6 = vmul.f32 %v775_v62, %v696_v57  ;;  %v938_v15 = vrot.slane %v937_v60, 2  ;;  %v1048_v18 = vrot.slane %v1047_v5, 4  ;;  %v1087_v36 = vrot.slane %v1086_v13, 1 }
  0xb9   : > { %v881_v7 = vmul.f32 %v740_v63, %v689_v22  ;;  %v988_v23 = vadd.f32 %v987_v2, %v986_v55  ;;  %v1098_v24 = vadd.f32 %v1097_v3, %v1096_v61  ;;  %v1171_v45 = vsel %vm640_vm3, %v934_v21, %v1170_v35  ;;  %v713_v61 = vld [vmem:[%s1931_s26 + $0xe0] sm:$0xff] }
  0xba   : > { %v991_v19 = vsel %vm303_vm1, %v888_v6, 0.0  ;;  %v1049_v28 = vadd.f32 %v1048_v18, %v1047_v5  ;;  %v939_v37 = vadd.f32 %v938_v15, %v937_v60  ;;  %v1046_v46 = vadd.f32 %v1045_v27, %v1044_v1 }
  0xbb   : > { %v942_v58 = vsel %vm303_vm1, %v881_v7, 0.0  ;;  %v855_v10 = vpop.permute.xlu1 %854  ;;  %v992_v25 = vrot.slane %v991_v19, 4  ;;  %v989_v41 = vrot.slane %v988_v23, 1  ;;  %v1099_v29 = vrot.slane %v1098_v24, 2  ;;  %v706_v7 = vld [vmem:[%s1931_s26 + $0xa8] sm:$0xff] }
  0xbc   : > { %v904_v30 = vmul.f32 %v855_v10, %v712_v14  ;;  %v820_v31 = vpop.permute.xlu0 %819  ;;  %v943_v33 = vrot.slane %v942_v58, 4  ;;  %v1050_v42 = vrot.slane %v1049_v28, 2  ;;  %v983_v47 = vadd.f32 %v982_v16, %v981_v4  ;;  %v698_v10 = vld [vmem:[%s1931_s26 + $0x68] sm:$0xff] }
  0xbd   : > { %v993_v32 = vadd.f32 %v992_v25, %v991_v19  ;;  %v897_v34 = vmul.f32 %v820_v31, %v705_v20  ;;  %v1095_v26 = vadd.f32 %v1094_v8, %v1093_v12  ;;  %v1088_v54 = vadd.f32 %v1087_v36, %v1086_v13  ;;  %v691_v20 = vld [vmem:[%s1931_s26 + $0x30] sm:$0xff] }
  0xbe   : > { %v1103_v38 = vsel %vm303_vm1, %v904_v30, 0.0  ;;  %v944_v52 = vadd.f32 %v943_v33, %v942_v58  ;;  %v940_v55 = vrot.slane %v939_v37, 1  ;;  %v990_v22 = vadd.f32 %v989_v41, %v988_v23 }
  0xbf   : > { %v780_v39 = vpop.permute.xlu1 %779  ;;  %v1054_v48 = vsel %vm303_vm1, %v897_v34, 0.0  ;;  %v994_v17 = vrot.slane %v993_v32, 2  ;;  %v1104_v53 = vrot.slane %v1103_v38, 4  ;;  %v1100_v49 = vadd.f32 %v1099_v29, %v1098_v24 }
  0xc0   : > { %v745_v50 = vpop.permute.xlu0 %744  ;;  %v889_v51 = vmul.f32 %v780_v39, %v697_v43  ;;  %v1051_v59 = vadd.f32 %v1050_v42, %v1049_v28  ;;  %v1055_v60 = vrot.slane %v1054_v48, 4  ;;  %v1976_v62 = vsel %vm640_vm3, %v1046_v46, %v1184_v9 }
  0xc1   : > { %v882_v56 = vmul.f32 %v745_v50, %v690_v44  ;;  %v1177_v63 = vsel %vm638_vm2, %v983_v47, %v976_v40  ;;  %v995_v3 = vadd.f32 %v994_v17, %v993_v32  ;;  %v945_v4 = vrot.slane %v944_v52, 2  ;;  %v714_v40 = vld [vmem:[%s1931_s26 + $0xe8] sm:$0xff]  ;;  %v707_v44 = vld [vmem:[%s1931_s26 + $0xb0] sm:$0xff] }
  0xc2   : > { %v998_v0 = vsel %vm303_vm1, %v889_v51, 0.0  ;;  %v1105_v5 = vadd.f32 %v1104_v53, %v1103_v38  ;;  %v1191_v11 = vsel %vm638_vm2, %v1095_v26, %v1088_v54  ;;  %v941_v12 = vadd.f32 %v940_v55, %v939_v37 }
  0xc3   : > { %v860_v57 = vpop.permute.xlu1 %859  ;;  %v949_v1 = vsel %vm303_vm1, %v882_v56, 0.0  ;;  %v999_v6 = vrot.slane %v998_v0, 4  ;;  %v1178_v15 = vsel %vm640_vm3, %v990_v22, %v1177_v63  ;;  %v1101_v18 = vrot.slane %v1100_v49, 1 }
  0xc4   : > { %v825_v2 = vpop.permute.xlu0 %824  ;;  %v950_v13 = vrot.slane %v949_v1, 4  ;;  %v905_v9 = vmul.f32 %v860_v57, %v713_v61  ;;  %v1052_v19 = vrot.slane %v1051_v59, 1  ;;  %v1056_v58 = vadd.f32 %v1055_v60, %v1054_v48 }
  0xc5   : > { %v1000_v21 = vadd.f32 %v999_v6, %v998_v0  ;;  %v898_v25 = vmul.f32 %v825_v2, %v706_v7  ;;  %v996_v16 = vrot.slane %v995_v3, 1  ;;  %v946_v28 = vadd.f32 %v945_v4, %v944_v52  ;;  %v699_v2 = vld [vmem:[%s1931_s26 + $0x70] sm:$0xff] }
  0xc6   : > { %v951_v23 = vadd.f32 %v950_v13, %v949_v1  ;;  %v1110_v24 = vsel %vm303_vm1, %v905_v9, 0.0  ;;  %v1106_v30 = vrot.slane %v1105_v5, 2  ;;  %v1172_v36 = vsel %vm642_vm4, %v941_v12, %v1171_v45 }
  0xc7   : > { %v785_v14 = vpop.permute.xlu1 %784  ;;  %v1111_v31 = vrot.slane %v1110_v24, 4  ;;  %v1061_v32 = vsel %vm303_vm1, %v898_v25, 0.0  ;;  %v1102_v37 = vadd.f32 %v1101_v18, %v1100_v49  ;;  %v1057_v38 = vrot.slane %v1056_v58, 2 }
  0xc8   : > { %v750_v27 = vpop.permute.xlu0 %749  ;;  %v952_v8 = vrot.slane %v951_v23, 2  ;;  %v890_v33 = vmul.f32 %v785_v14, %v698_v10  ;;  %v1001_v41 = vrot.slane %v1000_v21, 2  ;;  %v1053_v46 = vadd.f32 %v1052_v19, %v1051_v59 }
  0xc9   : > { %v883_v34 = vmul.f32 %v750_v27, %v691_v20  ;;  %v1112_v39 = vadd.f32 %v1111_v31, %v1110_v24  ;;  %v997_v47 = vadd.f32 %v996_v16, %v995_v3  ;;  %v947_v48 = vrot.slane %v946_v28, 1  ;;  %v692_v3 = vld [vmem:[%s1931_s26 + $0x38] sm:$0xff]  ;;  %v715_v24 = vld [vmem:[%s1931_s26 + $0xf0] sm:$0xff] }
  0xca   : > { %v953_v29 = vadd.f32 %v952_v8, %v951_v23  ;;  %v1005_v42 = vsel %vm303_vm1, %v890_v33, 0.0  ;;  %v1062_v50 = vrot.slane %v1061_v32, 4  ;;  %v1107_v26 = vadd.f32 %v1106_v30, %v1105_v5 }
  0xcb   : > { %v865_v35 = vpop.permute.xlu1 %864  ;;  %v956_v43 = vsel %vm303_vm1, %v883_v34, 0.0  ;;  %v1113_v17 = vrot.slane %v1112_v39, 2  ;;  %v1994_v55 = vsel %vm640_vm3, %v1102_v37, %v1191_v11  ;;  %v1058_v51 = vadd.f32 %v1057_v38, %v1056_v58  ;;  %v708_v34 = vld [vmem:[%s1931_s26 + $0xb8] sm:$0xff] }
  0xcc   : > { %v957_v52 = vrot.slane %v956_v43, 4  ;;  %v906_v45 = vmul.f32 %v865_v35, %v714_v40  ;;  %v1006_v56 = vrot.slane %v1005_v42, 4  ;;  %v1002_v22 = vadd.f32 %v1001_v41, %v1000_v21 }
  0xcd   : > { %v954_v49 = vrot.slane %v953_v29, 1  ;;  %v1999_v61 = vsel %vm642_vm4, %v1053_v46, %v1976_v62  ;;  %v948_v63 = vadd.f32 %v947_v48, %v946_v28  ;;  %v1063_v0 = vadd.f32 %v1062_v50, %v1061_v32 }
  0xce   : > { %v830_v53 = vpop.permute.xlu0 %829  ;;  %v958_v59 = vadd.f32 %v957_v52, %v956_v43  ;;  %v1117_v60 = vsel %vm303_vm1, %v906_v45, 0.0  ;;  %v2004_v4 = vsel %vm642_vm4, %v997_v47, %v1178_v15  ;;  %v1108_v5 = vrot.slane %v1107_v26, 1  ;;  %v716_v43 = vld [vmem:[%s1931_s26 + $0xf8] sm:$0xff] }
  0xcf   : > { %v790_v54 = vpop.permute.xlu1 %789  ;;  %v899_v57 = vmul.f32 %v830_v53, %v707_v44  ;;  %v1118_v1 = vrot.slane %v1117_v60, 4  ;;  %v1114_v6 = vadd.f32 %v1113_v17, %v1112_v39  ;;  %v1059_v12 = vrot.slane %v1058_v51, 1  ;;  %v700_v44 = vld [vmem:[%s1931_s26 + $0x78] sm:$0xff] }
  0xd0   : > { %v1007_v13 = vadd.f32 %v1006_v56, %v1005_v42  ;;  %v959_v9 = vrot.slane %v958_v59, 2  ;;  %v1003_v18 = vrot.slane %v1002_v22, 1  ;;  %v955_v19 = vadd.f32 %v954_v49, %v953_v29 }
  0xd1   : > { %v1068_v7 = vsel %vm303_vm1, %v899_v57, 0.0  ;;  %v891_v58 = vmul.f32 %v790_v54, %v699_v2  ;;  %v1173_v20 = vsel %vm644_vm5, %v948_v63, %v1172_v36  ;;  %v1064_v15 = vrot.slane %v1063_v0, 2 }
  0xd2   : > { %v755_v11 = vpop.permute.xlu0 %754  ;;  %v1069_v14 = vrot.slane %v1068_v7, 4  ;;  %v1119_v21 = vadd.f32 %v1118_v1, %v1117_v60  ;;  %v2009_v25 = vadd.f32 %v1108_v5, %v1107_v26  ;;  %v1115_v27 = vrot.slane %v1114_v6, 1 }
  0xd3   : > { %v870_v62 = vpop.permute.xlu1 %869  ;;  %v884_v10 = vmul.f32 %v755_v11, %v692_v3  ;;  %v1012_v16 = vsel %vm303_vm1, %v891_v58, 0.0  ;;  %v2013_v31 = vadd.f32 %v1059_v12, %v1058_v51  ;;  %v1008_v8 = vrot.slane %v1007_v13, 2 }
  0xd4   : > { %v1070_v23 = vadd.f32 %v1069_v14, %v1068_v7  ;;  %v960_v32 = vadd.f32 %v959_v9, %v958_v59  ;;  %v1013_v33 = vrot.slane %v1012_v16, 4  ;;  %v2016_v35 = vadd.f32 %v1003_v18, %v1002_v22 }
  0xd5   : > { %v963_v28 = vsel %vm303_vm1, %v884_v10, 0.0  ;;  %v1174_v36 = vsel %vm646_vm6, %v955_v19, %v1173_v20  ;;  %v907_v38 = vmul.f32 %v870_v62, %v715_v24  ;;  %v1065_v39 = vadd.f32 %v1064_v15, %v1063_v0  ;;  %v909_v10 = vld [vmem:[#allocation2] sm:$0xff] }
  0xd6   : > { %v835_v30 = vpop.permute.xlu0 %834  ;;  %v964_v37 = vrot.slane %v963_v28, 4  ;;  %v1120_v40 = vrot.slane %v1119_v21, 2  ;;  %v1071_v41 = vrot.slane %v1070_v23, 2  ;;  %v1014_v29 = vadd.f32 %v1013_v33, %v1012_v16 }
  0xd7   : > { %v875_v42 = vpop.permute.xlu1 %874  ;;  %v1116_v46 = vadd.f32 %v1115_v27, %v1114_v6  ;;  %v1124_v48 = vsel %vm303_vm1, %v907_v38, 0.0  ;;  %v900_v50 = vmul.f32 %v835_v30, %v708_v34  ;;  %v1009_v17 = vadd.f32 %v1008_v8, %v1007_v13 }
  0xd8   : > { %v965_v47 = vadd.f32 %v964_v37, %v963_v28  ;;  %v961_v52 = vrot.slane %v960_v32, 1  ;;  %v1015_v45 = vrot.slane %v1014_v29, 2  ;;  %v1125_v53 = vrot.slane %v1124_v48, 4 }
  0xd9   : > { %v1075_v51 = vsel %vm303_vm1, %v900_v50, 0.0  ;;  %v908_v56 = vmul.f32 %v875_v42, %v716_v43  ;;  %v1066_v22 = vrot.slane %v1065_v39, 1  ;;  %v1121_v49 = vadd.f32 %v1120_v40, %v1119_v21 }
  0xda   : > { %v795_v26 = vpop.permute.xlu0 %794  ;;  %v966_v54 = vrot.slane %v965_v47, 2  ;;  %v1072_v59 = vadd.f32 %v1071_v41, %v1070_v23  ;;  %v1126_v60 = vadd.f32 %v1125_v53, %v1124_v48  ;;  %v1076_v0 = vrot.slane %v1075_v51, 4  ;;  %v910_v53 = vld [vmem:[#allocation2 + $0x8] sm:$0xff] }
  0xdb   : > { %v892_v57 = vmul.f32 %v795_v26, %v700_v44  ;;  %v1131_v1 = vsel %vm303_vm1, %v908_v56, 0.0  ;;  %v962_v3 = vadd.f32 %v961_v52, %v960_v32  ;;  %v1016_v5 = vadd.f32 %v1015_v45, %v1014_v29 }
  0xdc   : > { %v967_v63 = vadd.f32 %v966_v54, %v965_v47  ;;  %v1127_v6 = vrot.slane %v1126_v60, 2  ;;  %v1132_v7 = vrot.slane %v1131_v1, 4  ;;  %v1010_v11 = vrot.slane %v1009_v17, 1 }
  0xdd   : > { %v1019_v2 = vsel %vm303_vm1, %v892_v57, 0.0  ;;  %v1077_v13 = vadd.f32 %v1076_v0, %v1075_v51  ;;  %v1122_v14 = vrot.slane %v1121_v49, 1  ;;  %v1073_v62 = vrot.slane %v1072_v59, 1 }
  0xde   : > { %v968_v12 = vrot.slane %v967_v63, 1  ;;  %v1020_v9 = vrot.slane %v1019_v2, 4  ;;  %v1128_v18 = vadd.f32 %v1127_v6, %v1126_v60  ;;  %v1133_v19 = vadd.f32 %v1132_v7, %v1131_v1 }
  0xdf   : > { %v1067_v58 = vadd.f32 %v1066_v22, %v1065_v39  ;;  %v1078_v15 = vrot.slane %v1077_v13, 2  ;;  %v1175_v23 = vsel %vm648_vm7, %v962_v3, %v1174_v36  ;;  %v1017_v24 = vrot.slane %v1016_v5, 1 }
  0xe0   : > { %v969_v20 = vadd.f32 %v968_v12, %v967_v63  ;;  %v1021_v21 = vadd.f32 %v1020_v9, %v1019_v2  ;;  %v1129_v27 = vrot.slane %v1128_v18, 1  ;;  %v1134_v16 = vrot.slane %v1133_v19, 2 }
  0xe1   : > { %v1011_v28 = vadd.f32 %v1010_v11, %v1009_v17  ;;  %v1079_v8 = vadd.f32 %v1078_v15, %v1077_v13  ;;  %v1123_v33 = vadd.f32 %v1122_v14, %v1121_v49  ;;  %v1074_v34 = vadd.f32 %v1073_v62, %v1072_v59  ;;  %v1483_v62 = vld [vmem:[%s2126_s3] ss:$0 sm:$0xff] }
  0xe2   : > { %v1176_v30 = vsel %vm650_vm8, %v969_v20, %v1175_v23  ;;  %v1022_v32 = vrot.slane %v1021_v21, 2  ;;  %v1135_v38 = vadd.f32 %v1134_v16, %v1133_v19  ;;  %v1193_v39 = vsel %vm642_vm4, %v2009_v25, %v1994_v55  ;;  %v911_v55 = vld [vmem:[#allocation2 + $0x10] sm:$0xff] }
  0xe3   : > { %v1202_v37 = vadd.f32 %v1176_v30, %v909_v10  ;;  %v1130_v40 = vadd.f32 %v1129_v27, %v1128_v18  ;;  %v1080_v41 = vrot.slane %v1079_v8, 1  ;;  %v1187_v36 = vsel %vm644_vm5, %v2013_v31, %v1999_v61  ;;  %v912_v31 = vld [vmem:[#allocation2 + $0x18] sm:$0xff] }
  0xe4   : > { %v1023_v29 = vadd.f32 %v1022_v32, %v1021_v21  ;;  %v1180_v42 = vsel %vm644_vm5, %v2016_v35, %v2004_v4  ;;  %v1018_v43 = vadd.f32 %v1017_v24, %v1016_v5  ;;  %v1136_v44 = vrot.slane %v1135_v38, 1 }
  0xe5   : > { %1206 = vst.msk [vmem:[#allocation2] sm:$0xff] %vm303_vm1, %v1202_v37  ;;  %v1194_v47 = vsel %vm644_vm5, %v1116_v46, %v1193_v39  ;;  %v1188_v48 = vsel %vm646_vm6, %v1067_v58, %v1187_v36  ;;  %v1081_v25 = vadd.f32 %v1080_v41, %v1079_v8  ;;  %v1181_v26 = vsel %vm646_vm6, %v1011_v28, %v1180_v42 }
  0xe6   : > { %v1024_v50 = vrot.slane %v1023_v29, 1  ;;  %v1195_v17 = vsel %vm646_vm6, %v1123_v33, %v1194_v47  ;;  %v1189_v61 = vsel %vm648_vm7, %v1074_v34, %v1188_v48  ;;  %v1137_v52 = vadd.f32 %v1136_v44, %v1135_v38 }
  0xe7   : > { %v1196_v35 = vsel %vm648_vm7, %v1130_v40, %v1195_v17  ;;  %v1190_v45 = vsel %vm650_vm8, %v1081_v25, %v1189_v61  ;;  %v1182_v54 = vsel %vm648_vm7, %v1018_v43, %v1181_v26 }
  0xe8   : > { %v1025_v46 = vadd.f32 %v1024_v50, %v1023_v29  ;;  %v1204_v51 = vadd.f32 %v1190_v45, %v911_v55  ;;  %v1197_v56 = vsel %vm650_vm8, %v1137_v52, %v1196_v35 }
  0xe9   : > { %v1228_v4 = vpop.permute.xlu0 %1227  ;;  %v1205_v57 = vadd.f32 %v1197_v56, %v912_v31 }
  0xea   : > { %1592 = vrcp.f32 %v1228_v4  ;;  %v1183_v22 = vsel %vm650_vm8, %v1025_v46, %v1182_v54  ;;  %1208 = vst.msk [vmem:[#allocation2 + $0x10] sm:$0xff] %vm303_vm1, %v1204_v51 }
  0xeb   : > { %v1203_v49 = vadd.f32 %v1183_v22, %v910_v53  ;;  %1209 = vst.msk [vmem:[#allocation2 + $0x18] sm:$0xff] %vm303_vm1, %v1205_v57 }
  0xec   : > { %v1213_v0 = vld [vmem:[#allocation2] sm:$0xff] }
  0xed   : > { %v1238_v59 = vpop.permute.xlu1 %1237  ;;  %1207 = vst.msk [vmem:[#allocation2 + $0x8] sm:$0xff] %vm303_vm1, %v1203_v49 }
  0xee   : > { %1594 = vrcp.f32 %v1238_v59 }
  0xf1   : > { %v1243_v60 = vpop.permute.xlu1 %1242  ;;  %v1215_v3 = vld [vmem:[#allocation2 + $0x10] sm:$0xff] }
  0xf2   : > { %1596 = vrcp.f32 %v1243_v60  ;;  %v1233_v63 = vpop.permute.xlu0 %1232  ;;  %v1216_v7 = vld [vmem:[#allocation2 + $0x18] sm:$0xff] }
  0xf3   : > { %1598 = vrcp.f32 %v1233_v63 }
  0xf4   : > { %v1593_v1 = vpop.eup %1592  ;;  %v1214_v11 = vld [vmem:[#allocation2 + $0x8] sm:$0xff] }
  0xf5   : > { %v1246_v2 = vmul.f32 %v1593_v1, %v1213_v0 }
  0xf7   : > { %1514 = vmatprep.mubr.msk.f32.mxu0 %vm303_vm1, %v1246_v2 }
  0xf8   : > { %v1595_v5 = vpop.eup %1594 }
  0xf9   : > { %v1250_v6 = vmul.f32 %v1595_v5, %v1215_v3 }
  0xfb   : > { %1517 = vmatprep.mubr.msk.f32.mxu1 %vm303_vm1, %v1250_v6 }
  0xfc   : > { %v1597_v12 = vpop.eup %1596 }
  0xfd   : > { %v1599_v13 = vpop.eup %1598  ;;  %v1252_v9 = vmul.f32 %v1597_v12, %v1216_v7 }
  0xfe   : > { %v1248_v14 = vmul.f32 %v1599_v13, %v1214_v11 }
  0xff   : > { %1518 = vmatmul.mubr.msk.f32.vlgmr.msra.gmra.mrb[0].mxu1 %vm303_vm1, %v1252_v9 }
 0x100   : > { %1515 = vmatmul.mubr.msk.f32.vlgmr.msra.gmra.mrb[0].mxu0 %vm303_vm1, %v1248_v14 }
 0x1d1   : > { %1372 = sbr.rel (!%p1750_p4) target bundleno = 500 (0x1f4), region = 48 }
 0x1d2   : > { %v1519_v18 = vpop.f32.mrb[0].mxu1 }
 0x1d3   : > { %v1516_v19 = vpop.f32.mrb[0].mxu0  ;;  %v1358_v58 = vadd.f32 %v1519_v18, %v1483_v62  ;;  %v1352_v10 = vpop.f32.mrb[1].mxu1 }
 0x1d4   : > { %v1348_v20 = vadd.f32 %v1516_v19, %v1483_v62  ;;  %v1342_v15 = vpop.f32.mrb[1].mxu0  ;;  %v1353_v21 = vadd.f32 %v1483_v62, %v1352_v10 }
 0x1d5   : > { %1364 = vst [vmem:[%s259_s7 + $0x18] sm:$0xff] %v1358_v58  ;;  %v1343_v23 = vadd.f32 %v1483_v62, %v1342_v15 }
 0x1d6   : > { %1362 = vst [vmem:[%s259_s7 + $0x8] sm:$0xff] %v1348_v20  ;;  %1363 = vst [vmem:[%s259_s7 + $0x10] sm:$0xff] %v1353_v21 }
 0x1d7   : > { %1361 = vst [vmem:[%s259_s7] sm:$0xff] %v1343_v23 }
 0x1d8   : > { %s2140_s10 = smov (!%p1375_p12, %s1374_s10), 4 }
 0x1d9   : > { %s2063_s11 = sshll.u32 %s2140_s10, 7 }
 0x1da   : > { %s1379_s12 = ssub.s32 512, %s2063_s11 }
 0x1db   : > { %1380 = vsyncadd %s2058_s8, %s1379_s12  ;;  %p1491_p13 = scmp.ne.s32.totalorder %s2063_s11, 0  ;;  %s1497_s13 = sshll.u32 %s1670_s18, 9 }
 0x1dc   : > { %s2072_s21 = scalar_lea.hbm %s2127_s4, %s1497_s13  ;;  %s1385_s22 = sshll.u32 %s259_s7, 4  ;;  %s2074_s22 = int_to_ptr.vmem [resolvable:$true] %s1385_s22 }
 0x1dd   : > { %s1600_s24 = scalar_lea.vmem %s2074_s22, %s2063_s11  ;;  %s1682_s26 = smov [#allocation4]  }
 0x1de   : > { %p1601_p0 = scmp.ne.s32.totalorder %s2074_s22, %s1600_s24  ;;  %s1604_s29 = sshll.u32 %s1682_s26, 4  ;;  %s1605_s29 = int_to_ptr.vmem [resolvable:$false] %s1604_s29 }
 0x1df   : > { %s1606_s18 = scalar_lea.vmem %s1605_s29, 1024  ;;  %p1607_p3 = scmp.lt.s32.totalorder %s2074_s22, %s1605_s29 }
 0x1e0   : > { %p1602_p1 = pnand %p1601_p0, %p1491_p13  ;;  %p1608_p4 = scmp.lt.s32.totalorder %s1606_s18, %s1600_s24 }
 0x1e2   : > { %p1603_p2 = pneg %p1602_p1  ;;  %p1609_p5 = por %p1608_p4, %p1607_p3 }
 0x1e4   : > { %p1610_p6 = pnand %p1609_p5, %p1603_p2 }
 0x1e6   : > { %1613 = shalt.err (!%p1610_p6)
}
 0x1e7   : > { %s1614_s30 = scalar_lea.hbm %s2072_s21, %s2063_s11  ;;  %s1618_s7 = scalar_lea.hbm %s2127_s4, 896 }
 0x1e8   : > { %p1615_p7 = scmp.ne.s32.totalorder %s2072_s21, %s1614_s30  ;;  %p1619_p11 = scmp.lt.u32.totalorder %s2072_s21, %s2127_s4 }
 0x1e9   : > { %p1620_p12 = scmp.lt.u32.totalorder %s1618_s7, %s1614_s30  ;;  %p1622_p1 = scmp.lt.u32.totalorder %s1614_s30, %s2072_s21 }
 0x1ea   : > { %p1616_p9 = pnand %p1615_p7, %p1491_p13 }
 0x1eb   : > { %p1621_p0 = por %p1620_p12, %p1619_p11 }
 0x1ec   : > { %p1617_p10 = pneg %p1616_p9 }
 0x1ed   : > { %p1623_p2 = por %p1622_p1, %p1621_p0 }
 0x1ef   : > { %p1624_p3 = pnand %p1623_p2, %p1617_p10 }
 0x1f1   : > { %1627 = shalt.err (!%p1624_p3)
}
 0x1f2   : > { %s1683_s12 = smov 128   ;;  %s1684_s13 = smov 8  }
 0x1f3   : > { %1391 = dma.vmem_to_hbm [thread:$0]  (%p1491_p13), %s2074_s22, %s2063_s11, %s2072_s21, %s2058_s8, %s1683_s12, %s1683_s12, %s1684_s13  }
 0x1f4 PF: > { %p1537_p4 = scmp.ge.s32.totalorder %s1678_s20, 2  ;;  %s1400_s14 = sand.u32 1, %s1658_s15  }
 0x1f5   : > { %s1401_s25 = scalar_lea.sflag [#allocation5], %s1400_s14 }
 0x1f6   : > { %p1534_p5 = pnand %p1537_p4, %p1757_p8 }
 0x1f8   : > { %1653 = dma.done.wait (!%p1534_p5), %s1401_s25, 512  }
 0x1f9   : > { %1655 = vsyncadd (!%p1534_p5), %s1401_s25, 4294966784  ;;  %s17_s20 = sadd.s32 1, %s1678_s20   ;;  %s2130_s15 = smov %s1662_s16 }
 0x1fa   : > { %p14_p6 = scmp.ge.s32.totalorder %s17_s20, 4   ;;  %s2131_s16 = smov %s1666_s17 }
 0x1fb   : > { %s2132_s17 = smov %s1763_s28  ;;  %s2133_s18 = smov %s1674_s19 }
 0x1fc   : > { %s2134_s19 = smov %s2136_s23  ;;  %16 = sbr.rel (!%p14_p6) target bundleno = 4 (0x4), region = 82 }
 0x203   :  { %1406 = vsyncpa [#allocation5], 1 }
 0x204   :  { %1408 = vsyncpa [#allocation5 + $0x1], 1 }

</bundles_post_ra>
